<compile_context>
chip_gen: v6e
topology: v6e:2x2x1
jax: 0.10.0
libtpu: 0.0.40
codegen_flags: <defaults>
</compile_context>

<pallas_src>
import math
import functools

import jax
import jax.numpy as jnp
from jax import lax
from jax.experimental import pallas as pl
from jax.experimental.pallas import tpu as pltpu


# ----------------------------------------------------------------------------
# Fused MHA kernel: one grid step == `batch_tile` batch elements.
#   xq/xk/xv : (batch_tile*S, D) f32 activations (cast to bf16 in-kernel)
#   w*_t     : (D, D) pre-transposed bf16 weights (resident, single-buffered)
#   b*       : (1, D) f32 biases
#   o_ref    : (batch_tile*Sq, D) output (bf16 by default)
#   optional attn_ref : (batch_tile, H, Sq, Sk) f32 attention probabilities
# ----------------------------------------------------------------------------
def _fused_mha_kernel(xq_ref, xk_ref, xv_ref,
                      wq_ref, wk_ref, wv_ref, wo_ref,
                      bq_ref, bk_ref, bv_ref, bo_ref,
                      o_ref, *opt_attn_ref,
                      batch_tile, seq_q, seq_k, head, d_k, scale,
                      compute_dtype):
    attn_ref = opt_attn_ref[0] if opt_attn_ref else None

    # Cast streamed f32 activations to the MXU dtype *inside* the kernel
    # (VPU work hidden under the matmuls; avoids a separate HBM round-trip).
    xq = xq_ref[...].astype(compute_dtype)          # (bt*Sq, D)
    xk = xk_ref[...].astype(compute_dtype)          # (bt*Sk, D)
    xv = xv_ref[...].astype(compute_dtype)          # (bt*Sk, D)

    # Row-batched fused Q/K/V projections: x @ W^T + b, M = bt*S rows each,
    # bf16 MXU inputs with f32 accumulation.
    q = jnp.dot(xq, wq_ref[...], preferred_element_type=jnp.float32) + bq_ref[...]
    k = jnp.dot(xk, wk_ref[...], preferred_element_type=jnp.float32) + bk_ref[...]
    v = jnp.dot(xv, wv_ref[...], preferred_element_type=jnp.float32) + bv_ref[...]

    # Fold 1/sqrt(d_k) into q (bt*S*D multiplies instead of S*S per head),
    # then cast q/k/v to bf16 ONCE on the full tensors (not per head slice).
    q = (q * scale).astype(compute_dtype)
    k = k.astype(compute_dtype)
    v = v.astype(compute_dtype)

    wo = wo_ref[...]                                # (D, D) bf16, resident
    bo = bo_ref[...]                                # (1, D) f32

    # Exact softmax normalization when the probabilities are returned;
    # EUP approx reciprocal (free slot) on the default path.
    exact_probs = attn_ref is not None

    out_rows = []
    for b in range(batch_tile):                     # static, unrolled
        q0 = b * seq_q
        k0 = b * seq_k
        out_b = jnp.zeros((seq_q, wo.shape[-1]), jnp.float32)
        for h in range(head):                       # static, unrolled
            c0 = h * d_k
            qh = q[q0:q0 + seq_q, c0:c0 + d_k]      # (Sq, d_k)
            kh = k[k0:k0 + seq_k, c0:c0 + d_k]      # (Sk, d_k)
            vh = v[k0:k0 + seq_k, c0:c0 + d_k]      # (Sk, d_k)

            # scores = q @ k^T without an explicit transpose (contract d_k).
            scores = lax.dot_general(
                qh, kh, (((1,), (1,)), ((), ())),
                preferred_element_type=jnp.float32)          # (Sq, Sk)

            m = jnp.max(scores, axis=-1, keepdims=True)
            p = jnp.exp(scores - m)
            denom = jnp.sum(p, axis=-1, keepdims=True)
            attn = p * pl.reciprocal(denom, approx=not exact_probs)
            if attn_ref is not None:
                attn_ref[b, h] = attn

            ctx_h = jnp.dot(attn.astype(compute_dtype), vh,
                            preferred_element_type=jnp.float32)   # (Sq, d_k)

            # Accumulate the output projection per head: lane-dense N = D,
            # no (Sq, D) concat of sub-lane-width ctx parts.
            out_b = out_b + jnp.dot(ctx_h.astype(compute_dtype),
                                    wo[c0:c0 + d_k, :],
                                    preferred_element_type=jnp.float32)
        out_rows.append(out_b)

    out_full = out_rows[0] if batch_tile == 1 else jnp.concatenate(out_rows, axis=0)
    o_ref[...] = (out_full + bo).astype(o_ref.dtype)


# ----------------------------------------------------------------------------
# Heuristic: largest divisor of B whose per-step working set fits a VMEM budget.
# ----------------------------------------------------------------------------
def _pick_batch_tile(B, Sq, Sk, D, out_bytes, budget=16 * 1024 * 1024):
    weights = 4 * D * D * 2 + 4 * D * 4                      # single-buffered W (bf16) + b (f32)
    per_b = ((Sq + 2 * Sk) * D * (2 * 4 + 4 + 2)             # dbl-buffered f32 in + q/k/v f32+bf16
             + Sq * D * (2 * out_bytes + 4))                 # dbl-buffered out + f32 accumulator
    scores = 4 * Sq * Sk * 4                                 # live scores/p/attn per head
    for bt in range(B, 0, -1):
        if B % bt == 0 and weights + scores + bt * per_b <= budget:
            return bt
    return 1


# ----------------------------------------------------------------------------
# Wrapper
# ----------------------------------------------------------------------------
def multi_head_attention(prep, query, key, value, head, *,
                         return_attn=False,
                         compute_dtype=jnp.bfloat16,
                         out_dtype=jnp.bfloat16,
                         batch_tile=None):
    """prep: output of prepare_params(); query/key/value: (B, S, D) float32."""
    B, Sq, D = query.shape
    Sk = key.shape[1]
    assert D % head == 0
    d_k = D // head
    scale = 1.0 / math.sqrt(d_k)

    if batch_tile is None:
        batch_tile = _pick_batch_tile(B, Sq, Sk, D, jnp.dtype(out_dtype).itemsize)
    assert B % batch_tile == 0
    grid = (B // batch_tile,)

    # Flatten batch x seq into the sublane axis (free metadata reshape); f32
    # goes straight into the kernel -- no wrapper-side cast op.
    xq2 = query.reshape(B * Sq, D)
    xk2 = key.reshape(B * Sk, D)
    xv2 = value.reshape(B * Sk, D)

    x_spec_q = pl.BlockSpec((batch_tile * Sq, D), lambda i: (i, 0))
    x_spec_k = pl.BlockSpec((batch_tile * Sk, D), lambda i: (i, 0))
    # Invariant weights / biases: resident across the grid, single-buffered.
    w_spec = pl.BlockSpec((D, D), lambda i: (0, 0), pipeline_mode=pl.Buffered(1))
    b_spec = pl.BlockSpec((1, D), lambda i: (0, 0), pipeline_mode=pl.Buffered(1))

    out_shapes = [jax.ShapeDtypeStruct((B * Sq, D), out_dtype)]
    out_specs = [pl.BlockSpec((batch_tile * Sq, D), lambda i: (i, 0))]
    if return_attn:
        # Debug-only path for small S: materializes the (B, H, Sq, Sk) probs.
        out_shapes.append(jax.ShapeDtypeStruct((B, head, Sq, Sk), jnp.float32))
        out_specs.append(pl.BlockSpec((batch_tile, head, Sq, Sk),
                                      lambda i: (i, 0, 0, 0)))

    kernel = functools.partial(
        _fused_mha_kernel, batch_tile=batch_tile, seq_q=Sq, seq_k=Sk,
        head=head, d_k=d_k, scale=scale, compute_dtype=compute_dtype)

    results = pl.pallas_call(
        kernel,
        out_shape=tuple(out_shapes),
        grid=grid,
        in_specs=[
            x_spec_q, x_spec_k, x_spec_k,
            w_spec, w_spec, w_spec, w_spec,
            b_spec, b_spec, b_spec, b_spec,
        ],
        out_specs=tuple(out_specs),
        compiler_params=pltpu.CompilerParams(
            dimension_semantics=("parallel",)),
    )(xq2, xk2, xv2,
      prep["wq_t"], prep["wk_t"], prep["wv_t"], prep["wo_t"],
      prep["bq"], prep["bk"], prep["bv"], prep["bo"])

    out = results[0].reshape(B, Sq, D)
    if return_attn:
        return out, results[1]
    return out


# ----------------------------------------------------------------------------
# Parameter handling
# ----------------------------------------------------------------------------
def init_params(key, d_model):
    """PyTorch nn.Linear-style layout: W (d_out, d_in), b (d_out,)."""
    bound = 1.0 / math.sqrt(d_model)
    names = ["q", "k", "v", "o"]
    keys = jax.random.split(key, 2 * len(names))
    params = {}
    for i, n in enumerate(names):
        params[f"w{n}"] = jax.random.uniform(
            keys[2 * i], (d_model, d_model), jnp.float32, -bound, bound)
        params[f"b{n}"] = jax.random.uniform(
            keys[2 * i + 1], (d_model,), jnp.float32, -bound, bound)
    return params


def prepare_params(params, compute_dtype=jnp.bfloat16):
    """Transpose weights ONCE (kernel consumes W^T) and cast to the MXU dtype."""
    prep = {}
    for n in ("q", "k", "v", "o"):
        prep[f"w{n}_t"] = jnp.asarray(
            params[f"w{n}"], jnp.float32).T.astype(compute_dtype)
        prep[f"b{n}"] = jnp.asarray(
            params[f"b{n}"], jnp.float32).reshape(1, -1)
    return prep


# ----------------------------------------------------------------------------
# Pure-JAX f32 reference (matches the PyTorch module, eval mode, mask=None)
# ----------------------------------------------------------------------------
def reference_mha(params, query, key, value, head):
    B, Sq, D = query.shape
    d_k = D // head

    def lin(x, w, b):
        return x @ w.T + b

    def split(x):
        return x.reshape(B, -1, head, d_k).transpose(0, 2, 1, 3)

    q = split(lin(query, params["wq"], params["bq"]))
    k = split(lin(key, params["wk"], params["bk"]))
    v = split(lin(value, params["wv"], params["bv"]))
    scores = jnp.einsum("bhqd,bhkd->bhqk", q, k) / math.sqrt(d_k)
    attn = jax.nn.softmax(scores, axis=-1)
    x = jnp.einsum("bhqk,bhkd->bhqd", attn, v)
    x = x.transpose(0, 2, 1, 3).reshape(B, Sq, D)
    return lin(x, params["wo"], params["bo"]), attn


if __name__ == "__main__":
    B, S, D, H = 2, 8, 32, 4          # batch, seq, d_model, heads (d_k = 8)

    root = jax.random.PRNGKey(0)
    kp, kq, kk, kv = jax.random.split(root, 4)
    params = init_params(kp, D)
    prep = prepare_params(params)                       # W^T + bf16, done once
    query = jax.random.normal(kq, (B, S, D), jnp.float32)
    key_in = jax.random.normal(kk, (B, S, D), jnp.float32)
    value = jax.random.normal(kv, (B, S, D), jnp.float32)

    # Default path: same return as nn.Module.forward (probs never materialized).
    out = multi_head_attention(prep, query, key_in, value, H)
    out = jax.block_until_ready(out)

    # Optional debug path exposing the attention probabilities (self.attn).
    out2, attn = multi_head_attention(prep, query, key_in, value, H,
                                      return_attn=True)
    out2 = jax.block_until_ready(out2)
    attn = jax.block_until_ready(attn)

    ref_out, ref_attn = reference_mha(params, query, key_in, value, H)

    assert out.shape == (B, S, D)
    assert attn.shape == (B, H, S, S)

    out_f32 = out.astype(jnp.float32)
    out2_f32 = out2.astype(jnp.float32)
    # bf16 MXU inputs and bf16 output -> tolerances loosened vs. f32 reference.
    assert jnp.allclose(out_f32, ref_out, atol=8e-2, rtol=8e-2), \
        float(jnp.max(jnp.abs(out_f32 - ref_out)))
    assert jnp.allclose(out2_f32, ref_out, atol=8e-2, rtol=8e-2), \
        float(jnp.max(jnp.abs(out2_f32 - ref_out)))
    assert jnp.allclose(attn, ref_attn, atol=3e-2, rtol=3e-2), \
        float(jnp.max(jnp.abs(attn - ref_attn)))

    print("KERNEL_OK")
</pallas_src>

<mosaic_0001>
module attributes {stable_mosaic.version = 11 : i64} {
  func.func @_fused_mha_kernel(%arg0: i32, %arg1: memref<16x32xf32, #tpu.memory_space<vmem>>, %arg2: memref<16x32xf32, #tpu.memory_space<vmem>>, %arg3: memref<16x32xf32, #tpu.memory_space<vmem>>, %arg4: memref<32x32xbf16, #tpu.memory_space<vmem>>, %arg5: memref<32x32xbf16, #tpu.memory_space<vmem>>, %arg6: memref<32x32xbf16, #tpu.memory_space<vmem>>, %arg7: memref<32x32xbf16, #tpu.memory_space<vmem>>, %arg8: memref<1x32xf32, #tpu.memory_space<vmem>>, %arg9: memref<1x32xf32, #tpu.memory_space<vmem>>, %arg10: memref<1x32xf32, #tpu.memory_space<vmem>>, %arg11: memref<1x32xf32, #tpu.memory_space<vmem>>, %arg12: memref<16x32xbf16, #tpu.memory_space<vmem>>) attributes {dimension_semantics = [#tpu.dimension_semantics<parallel>], iteration_bounds = array<i64: 1>, scalar_prefetch = 0 : i64, scratch_operands = 0 : i64, tpu.core_type = #tpu.core_type<tc>, window_params = [{transform_indices = @transform_0, window_bounds = array<i64: 16, 32>}, {transform_indices = @transform_1, window_bounds = array<i64: 16, 32>}, {transform_indices = @transform_2, window_bounds = array<i64: 16, 32>}, {pipeline_mode = #tpu.pipeline_mode<synchronous>, transform_indices = @transform_3, window_bounds = array<i64: 32, 32>}, {pipeline_mode = #tpu.pipeline_mode<synchronous>, transform_indices = @transform_4, window_bounds = array<i64: 32, 32>}, {pipeline_mode = #tpu.pipeline_mode<synchronous>, transform_indices = @transform_5, window_bounds = array<i64: 32, 32>}, {pipeline_mode = #tpu.pipeline_mode<synchronous>, transform_indices = @transform_6, window_bounds = array<i64: 32, 32>}, {pipeline_mode = #tpu.pipeline_mode<synchronous>, transform_indices = @transform_7, window_bounds = array<i64: 1, 32>}, {pipeline_mode = #tpu.pipeline_mode<synchronous>, transform_indices = @transform_8, window_bounds = array<i64: 1, 32>}, {pipeline_mode = #tpu.pipeline_mode<synchronous>, transform_indices = @transform_9, window_bounds = array<i64: 1, 32>}, {pipeline_mode = #tpu.pipeline_mode<synchronous>, transform_indices = @transform_10, window_bounds = array<i64: 1, 32>}, {transform_indices = @transform_11, window_bounds = array<i64: 16, 32>}]} {
    %c0 = arith.constant 0 : index
    %c0_0 = arith.constant 0 : index
    %0 = vector.load %arg1[%c0, %c0_0] : memref<16x32xf32, #tpu.memory_space<vmem>>, vector<16x32xf32>
    %1 = arith.truncf %0 : vector<16x32xf32> to vector<16x32xbf16>
    %c0_1 = arith.constant 0 : index
    %c0_2 = arith.constant 0 : index
    %2 = vector.load %arg2[%c0_1, %c0_2] : memref<16x32xf32, #tpu.memory_space<vmem>>, vector<16x32xf32>
    %3 = arith.truncf %2 : vector<16x32xf32> to vector<16x32xbf16>
    %c0_3 = arith.constant 0 : index
    %c0_4 = arith.constant 0 : index
    %4 = vector.load %arg3[%c0_3, %c0_4] : memref<16x32xf32, #tpu.memory_space<vmem>>, vector<16x32xf32>
    %5 = arith.truncf %4 : vector<16x32xf32> to vector<16x32xbf16>
    %c0_5 = arith.constant 0 : index
    %c0_6 = arith.constant 0 : index
    %6 = vector.load %arg4[%c0_5, %c0_6] : memref<32x32xbf16, #tpu.memory_space<vmem>>, vector<32x32xbf16>
    %cst = arith.constant dense<0.000000e+00> : vector<16x32xf32>
    %7 = tpu.matmul %1, %6, %cst {dimension_numbers = #tpu.dot_dimension_numbers<[1], [0], [0], [1], [0, 0, 1, 1], [], []>} : vector<16x32xbf16>, vector<32x32xbf16>, vector<16x32xf32> -> vector<16x32xf32>
    %c0_7 = arith.constant 0 : index
    %c0_8 = arith.constant 0 : index
    %8 = vector.load %arg8[%c0_7, %c0_8] : memref<1x32xf32, #tpu.memory_space<vmem>>, vector<1x32xf32>
    %9 = vector.broadcast %8 : vector<1x32xf32> to vector<16x32xf32>
    %10 = arith.addf %7, %9 : vector<16x32xf32>
    %c0_9 = arith.constant 0 : index
    %c0_10 = arith.constant 0 : index
    %11 = vector.load %arg5[%c0_9, %c0_10] : memref<32x32xbf16, #tpu.memory_space<vmem>>, vector<32x32xbf16>
    %cst_11 = arith.constant dense<0.000000e+00> : vector<16x32xf32>
    %12 = tpu.matmul %3, %11, %cst_11 {dimension_numbers = #tpu.dot_dimension_numbers<[1], [0], [0], [1], [0, 0, 1, 1], [], []>} : vector<16x32xbf16>, vector<32x32xbf16>, vector<16x32xf32> -> vector<16x32xf32>
    %c0_12 = arith.constant 0 : index
    %c0_13 = arith.constant 0 : index
    %13 = vector.load %arg9[%c0_12, %c0_13] : memref<1x32xf32, #tpu.memory_space<vmem>>, vector<1x32xf32>
    %14 = vector.broadcast %13 : vector<1x32xf32> to vector<16x32xf32>
    %15 = arith.addf %12, %14 : vector<16x32xf32>
    %c0_14 = arith.constant 0 : index
    %c0_15 = arith.constant 0 : index
    %16 = vector.load %arg6[%c0_14, %c0_15] : memref<32x32xbf16, #tpu.memory_space<vmem>>, vector<32x32xbf16>
    %cst_16 = arith.constant dense<0.000000e+00> : vector<16x32xf32>
    %17 = tpu.matmul %5, %16, %cst_16 {dimension_numbers = #tpu.dot_dimension_numbers<[1], [0], [0], [1], [0, 0, 1, 1], [], []>} : vector<16x32xbf16>, vector<32x32xbf16>, vector<16x32xf32> -> vector<16x32xf32>
    %c0_17 = arith.constant 0 : index
    %c0_18 = arith.constant 0 : index
    %18 = vector.load %arg10[%c0_17, %c0_18] : memref<1x32xf32, #tpu.memory_space<vmem>>, vector<1x32xf32>
    %19 = vector.broadcast %18 : vector<1x32xf32> to vector<16x32xf32>
    %20 = arith.addf %17, %19 : vector<16x32xf32>
    %cst_19 = arith.constant 0.353553385 : f32
    %21 = vector.broadcast %cst_19 : f32 to vector<16x32xf32>
    %22 = arith.mulf %10, %21 : vector<16x32xf32>
    %23 = arith.truncf %22 : vector<16x32xf32> to vector<16x32xbf16>
    %24 = arith.truncf %15 : vector<16x32xf32> to vector<16x32xbf16>
    %25 = arith.truncf %20 : vector<16x32xf32> to vector<16x32xbf16>
    %c0_20 = arith.constant 0 : index
    %c0_21 = arith.constant 0 : index
    %26 = vector.load %arg7[%c0_20, %c0_21] : memref<32x32xbf16, #tpu.memory_space<vmem>>, vector<32x32xbf16>
    %c0_22 = arith.constant 0 : index
    %c0_23 = arith.constant 0 : index
    %27 = vector.load %arg11[%c0_22, %c0_23] : memref<1x32xf32, #tpu.memory_space<vmem>>, vector<1x32xf32>
    %cst_24 = arith.constant 0.000000e+00 : f32
    %28 = vector.broadcast %cst_24 : f32 to vector<8x32xf32>
    %29 = vector.extract_strided_slice %23 {offsets = [0, 0], sizes = [8, 8], strides = [1, 1]} : vector<16x32xbf16> to vector<8x8xbf16>
    %30 = vector.extract_strided_slice %24 {offsets = [0, 0], sizes = [8, 8], strides = [1, 1]} : vector<16x32xbf16> to vector<8x8xbf16>
    %31 = vector.extract_strided_slice %25 {offsets = [0, 0], sizes = [8, 8], strides = [1, 1]} : vector<16x32xbf16> to vector<8x8xbf16>
    %cst_25 = arith.constant dense<0.000000e+00> : vector<8x8xf32>
    %32 = tpu.matmul %29, %30, %cst_25 {dimension_numbers = #tpu.dot_dimension_numbers<[1], [1], [0], [0], [0, 0, 1, 0], [], []>} : vector<8x8xbf16>, vector<8x8xbf16>, vector<8x8xf32> -> vector<8x8xf32>
    %cst_26 = arith.constant dense<0xFF800000> : vector<8xf32>
    %33 = vector.multi_reduction <maximumf>, %32, %cst_26 [1] : vector<8x8xf32> to vector<8xf32>
    %34 = vector.shape_cast %33 : vector<8xf32> to vector<8x1xf32>
    %35 = vector.broadcast %34 : vector<8x1xf32> to vector<8x8xf32>
    %36 = arith.subf %32, %35 : vector<8x8xf32>
    %37 = math.exp %36 : vector<8x8xf32>
    %cst_27 = arith.constant dense<0.000000e+00> : vector<8xf32>
    %38 = vector.multi_reduction <add>, %37, %cst_27 [1] : vector<8x8xf32> to vector<8xf32>
    %39 = vector.shape_cast %38 : vector<8xf32> to vector<8x1xf32>
    %40 = tpu.reciprocal %39 {approx = true} : vector<8x1xf32> -> vector<8x1xf32>
    %41 = vector.broadcast %40 : vector<8x1xf32> to vector<8x8xf32>
    %42 = arith.mulf %37, %41 : vector<8x8xf32>
    %43 = arith.truncf %42 : vector<8x8xf32> to vector<8x8xbf16>
    %cst_28 = arith.constant dense<0.000000e+00> : vector<8x8xf32>
    %44 = tpu.matmul %43, %31, %cst_28 {dimension_numbers = #tpu.dot_dimension_numbers<[1], [0], [0], [1], [0, 0, 1, 1], [], []>} : vector<8x8xbf16>, vector<8x8xbf16>, vector<8x8xf32> -> vector<8x8xf32>
    %45 = arith.truncf %44 : vector<8x8xf32> to vector<8x8xbf16>
    %46 = vector.extract_strided_slice %26 {offsets = [0, 0], sizes = [8, 32], strides = [1, 1]} : vector<32x32xbf16> to vector<8x32xbf16>
    %cst_29 = arith.constant dense<0.000000e+00> : vector<8x32xf32>
    %47 = tpu.matmul %45, %46, %cst_29 {dimension_numbers = #tpu.dot_dimension_numbers<[1], [0], [0], [1], [0, 0, 1, 1], [], []>} : vector<8x8xbf16>, vector<8x32xbf16>, vector<8x32xf32> -> vector<8x32xf32>
    %48 = arith.addf %28, %47 : vector<8x32xf32>
    %49 = vector.extract_strided_slice %23 {offsets = [0, 8], sizes = [8, 8], strides = [1, 1]} : vector<16x32xbf16> to vector<8x8xbf16>
    %50 = vector.extract_strided_slice %24 {offsets = [0, 8], sizes = [8, 8], strides = [1, 1]} : vector<16x32xbf16> to vector<8x8xbf16>
    %51 = vector.extract_strided_slice %25 {offsets = [0, 8], sizes = [8, 8], strides = [1, 1]} : vector<16x32xbf16> to vector<8x8xbf16>
    %cst_30 = arith.constant dense<0.000000e+00> : vector<8x8xf32>
    %52 = tpu.matmul %49, %50, %cst_30 {dimension_numbers = #tpu.dot_dimension_numbers<[1], [1], [0], [0], [0, 0, 1, 0], [], []>} : vector<8x8xbf16>, vector<8x8xbf16>, vector<8x8xf32> -> vector<8x8xf32>
    %cst_31 = arith.constant dense<0xFF800000> : vector<8xf32>
    %53 = vector.multi_reduction <maximumf>, %52, %cst_31 [1] : vector<8x8xf32> to vector<8xf32>
    %54 = vector.shape_cast %53 : vector<8xf32> to vector<8x1xf32>
    %55 = vector.broadcast %54 : vector<8x1xf32> to vector<8x8xf32>
    %56 = arith.subf %52, %55 : vector<8x8xf32>
    %57 = math.exp %56 : vector<8x8xf32>
    %cst_32 = arith.constant dense<0.000000e+00> : vector<8xf32>
    %58 = vector.multi_reduction <add>, %57, %cst_32 [1] : vector<8x8xf32> to vector<8xf32>
    %59 = vector.shape_cast %58 : vector<8xf32> to vector<8x1xf32>
    %60 = tpu.reciprocal %59 {approx = true} : vector<8x1xf32> -> vector<8x1xf32>
    %61 = vector.broadcast %60 : vector<8x1xf32> to vector<8x8xf32>
    %62 = arith.mulf %57, %61 : vector<8x8xf32>
    %63 = arith.truncf %62 : vector<8x8xf32> to vector<8x8xbf16>
    %cst_33 = arith.constant dense<0.000000e+00> : vector<8x8xf32>
    %64 = tpu.matmul %63, %51, %cst_33 {dimension_numbers = #tpu.dot_dimension_numbers<[1], [0], [0], [1], [0, 0, 1, 1], [], []>} : vector<8x8xbf16>, vector<8x8xbf16>, vector<8x8xf32> -> vector<8x8xf32>
    %65 = arith.truncf %64 : vector<8x8xf32> to vector<8x8xbf16>
    %66 = vector.extract_strided_slice %26 {offsets = [8, 0], sizes = [8, 32], strides = [1, 1]} : vector<32x32xbf16> to vector<8x32xbf16>
    %cst_34 = arith.constant dense<0.000000e+00> : vector<8x32xf32>
    %67 = tpu.matmul %65, %66, %cst_34 {dimension_numbers = #tpu.dot_dimension_numbers<[1], [0], [0], [1], [0, 0, 1, 1], [], []>} : vector<8x8xbf16>, vector<8x32xbf16>, vector<8x32xf32> -> vector<8x32xf32>
    %68 = arith.addf %48, %67 : vector<8x32xf32>
    %69 = vector.extract_strided_slice %23 {offsets = [0, 16], sizes = [8, 8], strides = [1, 1]} : vector<16x32xbf16> to vector<8x8xbf16>
    %70 = vector.extract_strided_slice %24 {offsets = [0, 16], sizes = [8, 8], strides = [1, 1]} : vector<16x32xbf16> to vector<8x8xbf16>
    %71 = vector.extract_strided_slice %25 {offsets = [0, 16], sizes = [8, 8], strides = [1, 1]} : vector<16x32xbf16> to vector<8x8xbf16>
    %cst_35 = arith.constant dense<0.000000e+00> : vector<8x8xf32>
    %72 = tpu.matmul %69, %70, %cst_35 {dimension_numbers = #tpu.dot_dimension_numbers<[1], [1], [0], [0], [0, 0, 1, 0], [], []>} : vector<8x8xbf16>, vector<8x8xbf16>, vector<8x8xf32> -> vector<8x8xf32>
    %cst_36 = arith.constant dense<0xFF800000> : vector<8xf32>
    %73 = vector.multi_reduction <maximumf>, %72, %cst_36 [1] : vector<8x8xf32> to vector<8xf32>
    %74 = vector.shape_cast %73 : vector<8xf32> to vector<8x1xf32>
    %75 = vector.broadcast %74 : vector<8x1xf32> to vector<8x8xf32>
    %76 = arith.subf %72, %75 : vector<8x8xf32>
    %77 = math.exp %76 : vector<8x8xf32>
    %cst_37 = arith.constant dense<0.000000e+00> : vector<8xf32>
    %78 = vector.multi_reduction <add>, %77, %cst_37 [1] : vector<8x8xf32> to vector<8xf32>
    %79 = vector.shape_cast %78 : vector<8xf32> to vector<8x1xf32>
    %80 = tpu.reciprocal %79 {approx = true} : vector<8x1xf32> -> vector<8x1xf32>
    %81 = vector.broadcast %80 : vector<8x1xf32> to vector<8x8xf32>
    %82 = arith.mulf %77, %81 : vector<8x8xf32>
    %83 = arith.truncf %82 : vector<8x8xf32> to vector<8x8xbf16>
    %cst_38 = arith.constant dense<0.000000e+00> : vector<8x8xf32>
    %84 = tpu.matmul %83, %71, %cst_38 {dimension_numbers = #tpu.dot_dimension_numbers<[1], [0], [0], [1], [0, 0, 1, 1], [], []>} : vector<8x8xbf16>, vector<8x8xbf16>, vector<8x8xf32> -> vector<8x8xf32>
    %85 = arith.truncf %84 : vector<8x8xf32> to vector<8x8xbf16>
    %86 = vector.extract_strided_slice %26 {offsets = [16, 0], sizes = [8, 32], strides = [1, 1]} : vector<32x32xbf16> to vector<8x32xbf16>
    %cst_39 = arith.constant dense<0.000000e+00> : vector<8x32xf32>
    %87 = tpu.matmul %85, %86, %cst_39 {dimension_numbers = #tpu.dot_dimension_numbers<[1], [0], [0], [1], [0, 0, 1, 1], [], []>} : vector<8x8xbf16>, vector<8x32xbf16>, vector<8x32xf32> -> vector<8x32xf32>
    %88 = arith.addf %68, %87 : vector<8x32xf32>
    %89 = vector.extract_strided_slice %23 {offsets = [0, 24], sizes = [8, 8], strides = [1, 1]} : vector<16x32xbf16> to vector<8x8xbf16>
    %90 = vector.extract_strided_slice %24 {offsets = [0, 24], sizes = [8, 8], strides = [1, 1]} : vector<16x32xbf16> to vector<8x8xbf16>
    %91 = vector.extract_strided_slice %25 {offsets = [0, 24], sizes = [8, 8], strides = [1, 1]} : vector<16x32xbf16> to vector<8x8xbf16>
    %cst_40 = arith.constant dense<0.000000e+00> : vector<8x8xf32>
    %92 = tpu.matmul %89, %90, %cst_40 {dimension_numbers = #tpu.dot_dimension_numbers<[1], [1], [0], [0], [0, 0, 1, 0], [], []>} : vector<8x8xbf16>, vector<8x8xbf16>, vector<8x8xf32> -> vector<8x8xf32>
    %cst_41 = arith.constant dense<0xFF800000> : vector<8xf32>
    %93 = vector.multi_reduction <maximumf>, %92, %cst_41 [1] : vector<8x8xf32> to vector<8xf32>
    %94 = vector.shape_cast %93 : vector<8xf32> to vector<8x1xf32>
    %95 = vector.broadcast %94 : vector<8x1xf32> to vector<8x8xf32>
    %96 = arith.subf %92, %95 : vector<8x8xf32>
    %97 = math.exp %96 : vector<8x8xf32>
    %cst_42 = arith.constant dense<0.000000e+00> : vector<8xf32>
    %98 = vector.multi_reduction <add>, %97, %cst_42 [1] : vector<8x8xf32> to vector<8xf32>
    %99 = vector.shape_cast %98 : vector<8xf32> to vector<8x1xf32>
    %100 = tpu.reciprocal %99 {approx = true} : vector<8x1xf32> -> vector<8x1xf32>
    %101 = vector.broadcast %100 : vector<8x1xf32> to vector<8x8xf32>
    %102 = arith.mulf %97, %101 : vector<8x8xf32>
    %103 = arith.truncf %102 : vector<8x8xf32> to vector<8x8xbf16>
    %cst_43 = arith.constant dense<0.000000e+00> : vector<8x8xf32>
    %104 = tpu.matmul %103, %91, %cst_43 {dimension_numbers = #tpu.dot_dimension_numbers<[1], [0], [0], [1], [0, 0, 1, 1], [], []>} : vector<8x8xbf16>, vector<8x8xbf16>, vector<8x8xf32> -> vector<8x8xf32>
    %105 = arith.truncf %104 : vector<8x8xf32> to vector<8x8xbf16>
    %106 = vector.extract_strided_slice %26 {offsets = [24, 0], sizes = [8, 32], strides = [1, 1]} : vector<32x32xbf16> to vector<8x32xbf16>
    %cst_44 = arith.constant dense<0.000000e+00> : vector<8x32xf32>
    %107 = tpu.matmul %105, %106, %cst_44 {dimension_numbers = #tpu.dot_dimension_numbers<[1], [0], [0], [1], [0, 0, 1, 1], [], []>} : vector<8x8xbf16>, vector<8x32xbf16>, vector<8x32xf32> -> vector<8x32xf32>
    %108 = arith.addf %88, %107 : vector<8x32xf32>
    %cst_45 = arith.constant 0.000000e+00 : f32
    %109 = vector.broadcast %cst_45 : f32 to vector<8x32xf32>
    %110 = vector.extract_strided_slice %23 {offsets = [8, 0], sizes = [8, 8], strides = [1, 1]} : vector<16x32xbf16> to vector<8x8xbf16>
    %111 = vector.extract_strided_slice %24 {offsets = [8, 0], sizes = [8, 8], strides = [1, 1]} : vector<16x32xbf16> to vector<8x8xbf16>
    %112 = vector.extract_strided_slice %25 {offsets = [8, 0], sizes = [8, 8], strides = [1, 1]} : vector<16x32xbf16> to vector<8x8xbf16>
    %cst_46 = arith.constant dense<0.000000e+00> : vector<8x8xf32>
    %113 = tpu.matmul %110, %111, %cst_46 {dimension_numbers = #tpu.dot_dimension_numbers<[1], [1], [0], [0], [0, 0, 1, 0], [], []>} : vector<8x8xbf16>, vector<8x8xbf16>, vector<8x8xf32> -> vector<8x8xf32>
    %cst_47 = arith.constant dense<0xFF800000> : vector<8xf32>
    %114 = vector.multi_reduction <maximumf>, %113, %cst_47 [1] : vector<8x8xf32> to vector<8xf32>
    %115 = vector.shape_cast %114 : vector<8xf32> to vector<8x1xf32>
    %116 = vector.broadcast %115 : vector<8x1xf32> to vector<8x8xf32>
    %117 = arith.subf %113, %116 : vector<8x8xf32>
    %118 = math.exp %117 : vector<8x8xf32>
    %cst_48 = arith.constant dense<0.000000e+00> : vector<8xf32>
    %119 = vector.multi_reduction <add>, %118, %cst_48 [1] : vector<8x8xf32> to vector<8xf32>
    %120 = vector.shape_cast %119 : vector<8xf32> to vector<8x1xf32>
    %121 = tpu.reciprocal %120 {approx = true} : vector<8x1xf32> -> vector<8x1xf32>
    %122 = vector.broadcast %121 : vector<8x1xf32> to vector<8x8xf32>
    %123 = arith.mulf %118, %122 : vector<8x8xf32>
    %124 = arith.truncf %123 : vector<8x8xf32> to vector<8x8xbf16>
    %cst_49 = arith.constant dense<0.000000e+00> : vector<8x8xf32>
    %125 = tpu.matmul %124, %112, %cst_49 {dimension_numbers = #tpu.dot_dimension_numbers<[1], [0], [0], [1], [0, 0, 1, 1], [], []>} : vector<8x8xbf16>, vector<8x8xbf16>, vector<8x8xf32> -> vector<8x8xf32>
    %126 = arith.truncf %125 : vector<8x8xf32> to vector<8x8xbf16>
    %127 = vector.extract_strided_slice %26 {offsets = [0, 0], sizes = [8, 32], strides = [1, 1]} : vector<32x32xbf16> to vector<8x32xbf16>
    %cst_50 = arith.constant dense<0.000000e+00> : vector<8x32xf32>
    %128 = tpu.matmul %126, %127, %cst_50 {dimension_numbers = #tpu.dot_dimension_numbers<[1], [0], [0], [1], [0, 0, 1, 1], [], []>} : vector<8x8xbf16>, vector<8x32xbf16>, vector<8x32xf32> -> vector<8x32xf32>
    %129 = arith.addf %109, %128 : vector<8x32xf32>
    %130 = vector.extract_strided_slice %23 {offsets = [8, 8], sizes = [8, 8], strides = [1, 1]} : vector<16x32xbf16> to vector<8x8xbf16>
    %131 = vector.extract_strided_slice %24 {offsets = [8, 8], sizes = [8, 8], strides = [1, 1]} : vector<16x32xbf16> to vector<8x8xbf16>
    %132 = vector.extract_strided_slice %25 {offsets = [8, 8], sizes = [8, 8], strides = [1, 1]} : vector<16x32xbf16> to vector<8x8xbf16>
    %cst_51 = arith.constant dense<0.000000e+00> : vector<8x8xf32>
    %133 = tpu.matmul %130, %131, %cst_51 {dimension_numbers = #tpu.dot_dimension_numbers<[1], [1], [0], [0], [0, 0, 1, 0], [], []>} : vector<8x8xbf16>, vector<8x8xbf16>, vector<8x8xf32> -> vector<8x8xf32>
    %cst_52 = arith.constant dense<0xFF800000> : vector<8xf32>
    %134 = vector.multi_reduction <maximumf>, %133, %cst_52 [1] : vector<8x8xf32> to vector<8xf32>
    %135 = vector.shape_cast %134 : vector<8xf32> to vector<8x1xf32>
    %136 = vector.broadcast %135 : vector<8x1xf32> to vector<8x8xf32>
    %137 = arith.subf %133, %136 : vector<8x8xf32>
    %138 = math.exp %137 : vector<8x8xf32>
    %cst_53 = arith.constant dense<0.000000e+00> : vector<8xf32>
    %139 = vector.multi_reduction <add>, %138, %cst_53 [1] : vector<8x8xf32> to vector<8xf32>
    %140 = vector.shape_cast %139 : vector<8xf32> to vector<8x1xf32>
    %141 = tpu.reciprocal %140 {approx = true} : vector<8x1xf32> -> vector<8x1xf32>
    %142 = vector.broadcast %141 : vector<8x1xf32> to vector<8x8xf32>
    %143 = arith.mulf %138, %142 : vector<8x8xf32>
    %144 = arith.truncf %143 : vector<8x8xf32> to vector<8x8xbf16>
    %cst_54 = arith.constant dense<0.000000e+00> : vector<8x8xf32>
    %145 = tpu.matmul %144, %132, %cst_54 {dimension_numbers = #tpu.dot_dimension_numbers<[1], [0], [0], [1], [0, 0, 1, 1], [], []>} : vector<8x8xbf16>, vector<8x8xbf16>, vector<8x8xf32> -> vector<8x8xf32>
    %146 = arith.truncf %145 : vector<8x8xf32> to vector<8x8xbf16>
    %147 = vector.extract_strided_slice %26 {offsets = [8, 0], sizes = [8, 32], strides = [1, 1]} : vector<32x32xbf16> to vector<8x32xbf16>
    %cst_55 = arith.constant dense<0.000000e+00> : vector<8x32xf32>
    %148 = tpu.matmul %146, %147, %cst_55 {dimension_numbers = #tpu.dot_dimension_numbers<[1], [0], [0], [1], [0, 0, 1, 1], [], []>} : vector<8x8xbf16>, vector<8x32xbf16>, vector<8x32xf32> -> vector<8x32xf32>
    %149 = arith.addf %129, %148 : vector<8x32xf32>
    %150 = vector.extract_strided_slice %23 {offsets = [8, 16], sizes = [8, 8], strides = [1, 1]} : vector<16x32xbf16> to vector<8x8xbf16>
    %151 = vector.extract_strided_slice %24 {offsets = [8, 16], sizes = [8, 8], strides = [1, 1]} : vector<16x32xbf16> to vector<8x8xbf16>
    %152 = vector.extract_strided_slice %25 {offsets = [8, 16], sizes = [8, 8], strides = [1, 1]} : vector<16x32xbf16> to vector<8x8xbf16>
    %cst_56 = arith.constant dense<0.000000e+00> : vector<8x8xf32>
    %153 = tpu.matmul %150, %151, %cst_56 {dimension_numbers = #tpu.dot_dimension_numbers<[1], [1], [0], [0], [0, 0, 1, 0], [], []>} : vector<8x8xbf16>, vector<8x8xbf16>, vector<8x8xf32> -> vector<8x8xf32>
    %cst_57 = arith.constant dense<0xFF800000> : vector<8xf32>
    %154 = vector.multi_reduction <maximumf>, %153, %cst_57 [1] : vector<8x8xf32> to vector<8xf32>
    %155 = vector.shape_cast %154 : vector<8xf32> to vector<8x1xf32>
    %156 = vector.broadcast %155 : vector<8x1xf32> to vector<8x8xf32>
    %157 = arith.subf %153, %156 : vector<8x8xf32>
    %158 = math.exp %157 : vector<8x8xf32>
    %cst_58 = arith.constant dense<0.000000e+00> : vector<8xf32>
    %159 = vector.multi_reduction <add>, %158, %cst_58 [1] : vector<8x8xf32> to vector<8xf32>
    %160 = vector.shape_cast %159 : vector<8xf32> to vector<8x1xf32>
    %161 = tpu.reciprocal %160 {approx = true} : vector<8x1xf32> -> vector<8x1xf32>
    %162 = vector.broadcast %161 : vector<8x1xf32> to vector<8x8xf32>
    %163 = arith.mulf %158, %162 : vector<8x8xf32>
    %164 = arith.truncf %163 : vector<8x8xf32> to vector<8x8xbf16>
    %cst_59 = arith.constant dense<0.000000e+00> : vector<8x8xf32>
    %165 = tpu.matmul %164, %152, %cst_59 {dimension_numbers = #tpu.dot_dimension_numbers<[1], [0], [0], [1], [0, 0, 1, 1], [], []>} : vector<8x8xbf16>, vector<8x8xbf16>, vector<8x8xf32> -> vector<8x8xf32>
    %166 = arith.truncf %165 : vector<8x8xf32> to vector<8x8xbf16>
    %167 = vector.extract_strided_slice %26 {offsets = [16, 0], sizes = [8, 32], strides = [1, 1]} : vector<32x32xbf16> to vector<8x32xbf16>
    %cst_60 = arith.constant dense<0.000000e+00> : vector<8x32xf32>
    %168 = tpu.matmul %166, %167, %cst_60 {dimension_numbers = #tpu.dot_dimension_numbers<[1], [0], [0], [1], [0, 0, 1, 1], [], []>} : vector<8x8xbf16>, vector<8x32xbf16>, vector<8x32xf32> -> vector<8x32xf32>
    %169 = arith.addf %149, %168 : vector<8x32xf32>
    %170 = vector.extract_strided_slice %23 {offsets = [8, 24], sizes = [8, 8], strides = [1, 1]} : vector<16x32xbf16> to vector<8x8xbf16>
    %171 = vector.extract_strided_slice %24 {offsets = [8, 24], sizes = [8, 8], strides = [1, 1]} : vector<16x32xbf16> to vector<8x8xbf16>
    %172 = vector.extract_strided_slice %25 {offsets = [8, 24], sizes = [8, 8], strides = [1, 1]} : vector<16x32xbf16> to vector<8x8xbf16>
    %cst_61 = arith.constant dense<0.000000e+00> : vector<8x8xf32>
    %173 = tpu.matmul %170, %171, %cst_61 {dimension_numbers = #tpu.dot_dimension_numbers<[1], [1], [0], [0], [0, 0, 1, 0], [], []>} : vector<8x8xbf16>, vector<8x8xbf16>, vector<8x8xf32> -> vector<8x8xf32>
    %cst_62 = arith.constant dense<0xFF800000> : vector<8xf32>
    %174 = vector.multi_reduction <maximumf>, %173, %cst_62 [1] : vector<8x8xf32> to vector<8xf32>
    %175 = vector.shape_cast %174 : vector<8xf32> to vector<8x1xf32>
    %176 = vector.broadcast %175 : vector<8x1xf32> to vector<8x8xf32>
    %177 = arith.subf %173, %176 : vector<8x8xf32>
    %178 = math.exp %177 : vector<8x8xf32>
    %cst_63 = arith.constant dense<0.000000e+00> : vector<8xf32>
    %179 = vector.multi_reduction <add>, %178, %cst_63 [1] : vector<8x8xf32> to vector<8xf32>
    %180 = vector.shape_cast %179 : vector<8xf32> to vector<8x1xf32>
    %181 = tpu.reciprocal %180 {approx = true} : vector<8x1xf32> -> vector<8x1xf32>
    %182 = vector.broadcast %181 : vector<8x1xf32> to vector<8x8xf32>
    %183 = arith.mulf %178, %182 : vector<8x8xf32>
    %184 = arith.truncf %183 : vector<8x8xf32> to vector<8x8xbf16>
    %cst_64 = arith.constant dense<0.000000e+00> : vector<8x8xf32>
    %185 = tpu.matmul %184, %172, %cst_64 {dimension_numbers = #tpu.dot_dimension_numbers<[1], [0], [0], [1], [0, 0, 1, 1], [], []>} : vector<8x8xbf16>, vector<8x8xbf16>, vector<8x8xf32> -> vector<8x8xf32>
    %186 = arith.truncf %185 : vector<8x8xf32> to vector<8x8xbf16>
    %187 = vector.extract_strided_slice %26 {offsets = [24, 0], sizes = [8, 32], strides = [1, 1]} : vector<32x32xbf16> to vector<8x32xbf16>
    %cst_65 = arith.constant dense<0.000000e+00> : vector<8x32xf32>
    %188 = tpu.matmul %186, %187, %cst_65 {dimension_numbers = #tpu.dot_dimension_numbers<[1], [0], [0], [1], [0, 0, 1, 1], [], []>} : vector<8x8xbf16>, vector<8x32xbf16>, vector<8x32xf32> -> vector<8x32xf32>
    %189 = arith.addf %169, %188 : vector<8x32xf32>
    %190 = tpu.concatenate %108, %189 in 0 : vector<8x32xf32>, vector<8x32xf32> -> vector<16x32xf32>
    %191 = vector.broadcast %27 : vector<1x32xf32> to vector<16x32xf32>
    %192 = arith.addf %190, %191 : vector<16x32xf32>
    %193 = arith.truncf %192 : vector<16x32xf32> to vector<16x32xbf16>
    %c0_66 = arith.constant 0 : index
    %c0_67 = arith.constant 0 : index
    %194 = vector.load %arg12[%c0_66, %c0_67] : memref<16x32xbf16, #tpu.memory_space<vmem>>, vector<16x32xbf16>
    tpu.vector_store %arg12[%c0_66, %c0_67], %193 {strides = array<i32>} : memref<16x32xbf16, #tpu.memory_space<vmem>>, vector<16x32xbf16>,
    return
  }
  func.func @transform_0(%arg0: i32) -> (i32, i32) {
    %c0_i32 = arith.constant 0 : i32
    %c0_i32_0 = arith.constant 0 : i32
    return %arg0, %c0_i32 : i32, i32
  }
  func.func @transform_1(%arg0: i32) -> (i32, i32) {
    %c0_i32 = arith.constant 0 : i32
    %c0_i32_0 = arith.constant 0 : i32
    return %arg0, %c0_i32 : i32, i32
  }
  func.func @transform_2(%arg0: i32) -> (i32, i32) {
    %c0_i32 = arith.constant 0 : i32
    %c0_i32_0 = arith.constant 0 : i32
    return %arg0, %c0_i32 : i32, i32
  }
  func.func @transform_3(%arg0: i32) -> (i32, i32) {
    %c0_i32 = arith.constant 0 : i32
    %c0_i32_0 = arith.constant 0 : i32
    %c0_i32_1 = arith.constant 0 : i32
    return %c0_i32, %c0_i32_0 : i32, i32
  }
  func.func @transform_4(%arg0: i32) -> (i32, i32) {
    %c0_i32 = arith.constant 0 : i32
    %c0_i32_0 = arith.constant 0 : i32
    %c0_i32_1 = arith.constant 0 : i32
    return %c0_i32, %c0_i32_0 : i32, i32
  }
  func.func @transform_5(%arg0: i32) -> (i32, i32) {
    %c0_i32 = arith.constant 0 : i32
    %c0_i32_0 = arith.constant 0 : i32
    %c0_i32_1 = arith.constant 0 : i32
    return %c0_i32, %c0_i32_0 : i32, i32
  }
  func.func @transform_6(%arg0: i32) -> (i32, i32) {
    %c0_i32 = arith.constant 0 : i32
    %c0_i32_0 = arith.constant 0 : i32
    %c0_i32_1 = arith.constant 0 : i32
    return %c0_i32, %c0_i32_0 : i32, i32
  }
  func.func @transform_7(%arg0: i32) -> (i32, i32) {
    %c0_i32 = arith.constant 0 : i32
    %c0_i32_0 = arith.constant 0 : i32
    %c0_i32_1 = arith.constant 0 : i32
    return %c0_i32, %c0_i32_0 : i32, i32
  }
  func.func @transform_8(%arg0: i32) -> (i32, i32) {
    %c0_i32 = arith.constant 0 : i32
    %c0_i32_0 = arith.constant 0 : i32
    %c0_i32_1 = arith.constant 0 : i32
    return %c0_i32, %c0_i32_0 : i32, i32
  }
  func.func @transform_9(%arg0: i32) -> (i32, i32) {
    %c0_i32 = arith.constant 0 : i32
    %c0_i32_0 = arith.constant 0 : i32
    %c0_i32_1 = arith.constant 0 : i32
    return %c0_i32, %c0_i32_0 : i32, i32
  }
  func.func @transform_10(%arg0: i32) -> (i32, i32) {
    %c0_i32 = arith.constant 0 : i32
    %c0_i32_0 = arith.constant 0 : i32
    %c0_i32_1 = arith.constant 0 : i32
    return %c0_i32, %c0_i32_0 : i32, i32
  }
  func.func @transform_11(%arg0: i32) -> (i32, i32) {
    %c0_i32 = arith.constant 0 : i32
    %c0_i32_0 = arith.constant 0 : i32
    return %arg0, %c0_i32 : i32, i32
  }
}

</mosaic_0001>

<bundles_post_ra>
// kernel: tpu_custom_call.1
= control target key start
LH: loop header
LB: loop body
LE: loop exit
PB: predicated region body
PF: predicated region fallthrough
CT: control target
= control target key end

     0   :  { %16 = vsyncpa [#allocation3], 0  ;;  %s2505_s0 = inlined_call_operand.hbm [shape: f32[16,32], index: 0, kind: input, shape index: {}]   ;;  %s2506_s1 = inlined_call_operand.hbm [shape: f32[16,32], index: 1, kind: input, shape index: {}]   ;;  %s2507_s2 = inlined_call_operand.hbm [shape: f32[16,32], index: 2, kind: input, shape index: {}]   ;;  %s2508_s3 = inlined_call_operand.hbm [shape: bf16[32,32], index: 3, kind: input, shape index: {}]   ;;  %s2509_s4 = inlined_call_operand.hbm [shape: bf16[32,32], index: 4, kind: input, shape index: {}]   ;;  %s2510_s5 = inlined_call_operand.hbm [shape: bf16[32,32], index: 5, kind: input, shape index: {}]   ;;  %s2511_s6 = inlined_call_operand.hbm [shape: bf16[32,32], index: 6, kind: input, shape index: {}]   ;;  %s2512_s7 = inlined_call_operand.vmem [shape: f32[1,32], index: 7, kind: input, shape index: {}]   ;;  %s2513_s8 = inlined_call_operand.vmem [shape: f32[1,32], index: 8, kind: input, shape index: {}]   ;;  %s2514_s9 = inlined_call_operand.vmem [shape: f32[1,32], index: 9, kind: input, shape index: {}]   ;;  %s2515_s10 = inlined_call_operand.vmem [shape: f32[1,32], index: 10, kind: input, shape index: {}]   ;;  %s2516_s11 = inlined_call_operand.hbm [shape: bf16[16,32], index: 11, kind: output, shape index: {}]  }
   0x1   :  { %17 = vsyncpa [#allocation6], 0 }
   0x2   :  { %18 = vsyncpa [#allocation9], 0 }
   0x3   :  { %19 = vsyncpa [#allocation12], 0 }
   0x4   :  { %20 = vsyncpa [#allocation4], 0  ;;  %s2130_s17 = smov [#allocation5]   ;;  %s2131_s19 = smov [#allocation8]  }
   0x5   :  { %s38_s18 = sshll.u32 %s2130_s17, 4  ;;  %s62_s20 = sshll.u32 %s2131_s19, 4  ;;  %s39_s18 = int_to_ptr.vmem [resolvable:$true] %s38_s18  ;;  %s63_s20 = int_to_ptr.vmem [resolvable:$true] %s62_s20 }
   0x6   :  { %s1968_s21 = scalar_lea.vmem %s39_s18, 256  ;;  %p1973_p1 = scmp.lt.s32.totalorder %s39_s18, %s39_s18 }
   0x7   :  { %p1969_p0 = scmp.ne.s32.totalorder %s39_s18, %s1968_s21  ;;  %p1974_p2 = scmp.lt.s32.totalorder %s1968_s21, %s1968_s21 }
   0x9   :  { %p1975_p3 = por %p1974_p2, %p1973_p1 }
   0xb   :  { %p1976_p4 = pnand %p1975_p3, %p1969_p0 }
   0xd   :  { %1979 = shalt.err (!%p1976_p4)
}
   0xe   :  { %s2132_s22 = smov 128   ;;  %s2133_s23 = smov 8  }
   0xf   :  { %44 = dma.hbm_to_vmem [thread:$0]  %s2506_s1, 256, %s39_s18, [#allocation6], %s2132_s22, %s2132_s22, %s2133_s23  }
  0x10   :  { %s1988_s26 = scalar_lea.vmem %s63_s20, 256  ;;  %p1993_p6 = scmp.lt.s32.totalorder %s63_s20, %s63_s20 }
  0x11   :  { %p1989_p5 = scmp.ne.s32.totalorder %s63_s20, %s1988_s26  ;;  %p1994_p7 = scmp.lt.s32.totalorder %s1988_s26, %s1988_s26 }
  0x13   :  { %p1995_p8 = por %p1994_p7, %p1993_p6 }
  0x15   :  { %p1996_p9 = pnand %p1995_p8, %p1989_p5 }
  0x17   :  { %1999 = shalt.err (!%p1996_p9)
}
  0x18   :  { %s2134_s27 = smov 64   ;;  %s2135_s28 = smov 4  }
  0x19   :  { %68 = dma.hbm_to_vmem [thread:$0]  %s2508_s3, 256, %s63_s20, [#allocation9], %s2134_s27, %s2134_s27, %s2135_s28  }
  0x1a   :  { %s2136_s12 = smov [#allocation11]   ;;  %s2137_s14 = smov [#allocation2]  }
  0x1b   :  { %s86_s13 = sshll.u32 %s2136_s12, 4  ;;  %s26_s1 = sshll.u32 %s2137_s14, 4  ;;  %s87_s13 = int_to_ptr.vmem [resolvable:$true] %s86_s13  ;;  %s27_s1 = int_to_ptr.vmem [resolvable:$true] %s26_s1 }
  0x1c   :  { %s2008_s15 = scalar_lea.vmem %s87_s13, 256  ;;  %p2013_p11 = scmp.lt.s32.totalorder %s87_s13, %s87_s13 }
  0x1d   :  { %p2009_p10 = scmp.ne.s32.totalorder %s87_s13, %s2008_s15  ;;  %p2014_p12 = scmp.lt.s32.totalorder %s2008_s15, %s2008_s15 }
  0x1f   :  { %p2015_p13 = por %p2014_p12, %p2013_p11 }
  0x21   :  { %p2016_p0 = pnand %p2015_p13, %p2009_p10 }
  0x23   :  { %2019 = shalt.err (!%p2016_p0)
}
  0x24   :  { %92 = dma.hbm_to_vmem [thread:$0]  %s2510_s5, 256, %s87_s13, [#allocation12], %s2134_s27, %s2134_s27, %s2135_s28  }
  0x25   :  { %s2028_s3 = scalar_lea.vmem %s27_s1, 256  ;;  %p2033_p2 = scmp.lt.s32.totalorder %s27_s1, %s27_s1 }
  0x26   :  { %p2029_p1 = scmp.ne.s32.totalorder %s27_s1, %s2028_s3  ;;  %p2034_p3 = scmp.lt.s32.totalorder %s2028_s3, %s2028_s3 }
  0x28   :  { %p2035_p4 = por %p2034_p3, %p2033_p2 }
  0x2a   :  { %p2036_p5 = pnand %p2035_p4, %p2029_p1 }
  0x2c   :  { %2039 = shalt.err (!%p2036_p5)
}
  0x2d   :  { %32 = dma.hbm_to_vmem [thread:$0]  %s2505_s0, 256, %s27_s1, [#allocation3], %s2132_s22, %s2132_s22, %s2133_s23  }
  0x2e   :  { %s2138_s20 = smov [#allocation7]   ;;  %s2139_s24 = smov [#allocation10]  }
  0x2f   :  { %s50_s21 = sshll.u32 %s2138_s20, 4  ;;  %s74_s25 = sshll.u32 %s2139_s24, 4  ;;  %s51_s21 = int_to_ptr.vmem [resolvable:$true] %s50_s21  ;;  %s75_s25 = int_to_ptr.vmem [resolvable:$true] %s74_s25 }
  0x30   :  { %s2048_s5 = scalar_lea.vmem %s51_s21, 256  ;;  %p2053_p7 = scmp.lt.s32.totalorder %s51_s21, %s51_s21 }
  0x31   :  { %p2049_p6 = scmp.ne.s32.totalorder %s51_s21, %s2048_s5  ;;  %p2054_p8 = scmp.lt.s32.totalorder %s2048_s5, %s2048_s5 }
  0x33   :  { %p2055_p9 = por %p2054_p8, %p2053_p7 }
  0x35   :  { %p2056_p10 = pnand %p2055_p9, %p2049_p6 }
  0x37   :  { %2059 = shalt.err (!%p2056_p10)
}
  0x38   :  { %56 = dma.hbm_to_vmem [thread:$0]  %s2507_s2, 256, %s51_s21, [#allocation6], %s2132_s22, %s2132_s22, %s2133_s23  }
  0x39   :  { %s2068_s0 = scalar_lea.vmem %s75_s25, 256  ;;  %p2073_p12 = scmp.lt.s32.totalorder %s75_s25, %s75_s25 }
  0x3a   :  { %p2069_p11 = scmp.ne.s32.totalorder %s75_s25, %s2068_s0  ;;  %p2074_p13 = scmp.lt.s32.totalorder %s2068_s0, %s2068_s0 }
  0x3c   :  { %p2075_p0 = por %p2074_p13, %p2073_p12 }
  0x3e   :  { %p2076_p1 = pnand %p2075_p0, %p2069_p11 }
  0x40   :  { %2079 = shalt.err (!%p2076_p1)
}
  0x41   :  { %80 = dma.hbm_to_vmem [thread:$0]  %s2509_s4, 256, %s75_s25, [#allocation9], %s2134_s27, %s2134_s27, %s2135_s28  }
  0x42   :  { %s2140_s13 = smov [#allocation13]  }
  0x43   :  { %s98_s14 = sshll.u32 %s2140_s13, 4  ;;  %s99_s14 = int_to_ptr.vmem [resolvable:$true] %s98_s14 }
  0x44   :  { %s2088_s1 = scalar_lea.vmem %s99_s14, 256  ;;  %p2093_p3 = scmp.lt.s32.totalorder %s99_s14, %s99_s14 }
  0x45   :  { %p2089_p2 = scmp.ne.s32.totalorder %s99_s14, %s2088_s1  ;;  %p2094_p4 = scmp.lt.s32.totalorder %s2088_s1, %s2088_s1 }
  0x47   :  { %p2095_p5 = por %p2094_p4, %p2093_p3 }
  0x49   :  { %p2096_p6 = pnand %p2095_p5, %p2089_p2 }
  0x4b   :  { %2099 = shalt.err (!%p2096_p6)
}
  0x4c   :  { %104 = dma.hbm_to_vmem [thread:$0]  %s2511_s6, 256, %s99_s14, [#allocation12], %s2134_s27, %s2134_s27, %s2135_s28  }
  0x4d   :  { %2120 = dma.done.wait [#allocation3], 256  }
  0x4e   :  { %2121 = vsyncadd [#allocation3], 4294967040 }
  0x4f   :  { %2122 = dma.done.wait [#allocation6], 512  }
  0x50   :  { %2123 = vsyncadd [#allocation6], 4294966784 }
  0x51   :  { %2124 = dma.done.wait [#allocation9], 512  }
  0x52   :  { %2125 = vsyncadd [#allocation9], 4294966784 }
  0x53   :  { %2126 = dma.done.wait [#allocation12], 512  }
  0x54   :  { %2127 = vsyncadd [#allocation12], 4294966784  ;;  %v2141_v0 = vmov 0.0   ;;  %vm2142_vm0 = vmmov 0   ;;  %v1922_v1 = vld [vmem:[#allocation10 + $0x8] sm:$0xff]   ;;  %v1923_v2 = vld [vmem:[#allocation8 + $0x8] sm:$0xff]  }
  0x55   :  { %1745 = vmatprep.subr.bf16.mxu1 %v2141_v0  ;;  %1737 = vmatprep.subr.bf16.mxu0 %v2141_v0  ;;  %v1924_v3 = vld [vmem:[#allocation10] sm:$0xff]   ;;  %v1925_v4 = vld [vmem:[#allocation8] sm:$0xff]   ;;  %v139_v6 = vld [vmem:[#allocation5 + $0x8] sm:$0xff]  ;;  %vm167_vm1 = vcmask 261120   ;;  %vm356_vm2 = vcmask 64512   ;;  %vm418_vm3 = vcmask 1043456  }
  0x56   :  { %1749 = vmatprep.mubr.msk.bf16.mxu1 %vm2142_vm0, %v2141_v0  ;;  %1741 = vmatprep.mubr.msk.bf16.mxu0 %vm2142_vm0, %v2141_v0  ;;  %v138_v5 = vld [vmem:[#allocation5] sm:$0xff]  ;;  %v135_v7 = vld [vmem:[#allocation2] sm:$0xff]  ;;  %v136_v9 = vld [vmem:[#allocation2 + $0x8] sm:$0xff]  ;;  %s2144_s17 = smov 112   ;;  %vm1616_vm4 = vcmask 257024  }
  0x57   :  { %1746 = vmatpush3.bf16.msra.mxu1 %v1922_v1  ;;  %1738 = vmatpush3.bf16.msra.mxu0 %v1923_v2  ;;  %v140_v8 = vpack.c.bf16 %v139_v6, %v138_v5  ;;  %v137_v10 = vpack.c.bf16 %v136_v9, %v135_v7  ;;  %v1639_v11 = vld [vmem:[%s2512_s7] ss:$0 sm:$0xff]  ;;  %s2143_s7 = smov 120   ;;  %v1926_v30 = vld [vmem:[#allocation11 + $0x8] sm:$0xff]   ;;  %v1927_v31 = vld [vmem:[#allocation11] sm:$0xff]  }
  0x58   :  { %1747 = vmatprep.subr.bf16.mxu1 %v2141_v0  ;;  %1739 = vmatprep.subr.bf16.mxu0 %v2141_v0  ;;  %v1643_v14 = vld [vmem:[%s2513_s8] ss:$0 sm:$0xff]  ;;  %v142_v33 = vld [vmem:[#allocation7 + $0x8] sm:$0xff] }
  0x59   :  { %v141_v32 = vld [vmem:[#allocation7] sm:$0xff] }
  0x5a   :  { %v143_v34 = vpack.c.bf16 %v142_v33, %v141_v32  ;;  %v1647_v57 = vld [vmem:[%s2514_s9] ss:$0 sm:$0xff]  ;;  %s2145_s9 = smov 104  }
  0x5b   :  { %1748 = vmatpush3.bf16.msra.mxu1 %v1924_v3  ;;  %1740 = vmatpush3.bf16.msra.mxu0 %v1925_v4 }
  0x5c   :  { %1761 = vmatprep.subr.bf16.mxu1 %v2141_v0  ;;  %1753 = vmatprep.subr.bf16.mxu0 %v2141_v0 }
  0x5e   :  { %1750 = vmatmul.mubr.msk.bf16.vlgmr.msra.gmra.mxu1 %vm167_vm1, %v140_v8  ;;  %1742 = vmatmul.mubr.msk.bf16.vlgmr.msra.gmra.mxu0 %vm167_vm1, %v137_v10  ;;  %v352_v8 = vld [vmem:[#allocation13 + $0x4] sm:$0xf] }
  0x5f   :  { %1763 = vmatprep.mubr.msk.bf16.mxu1 %vm2142_vm0, %v2141_v0  ;;  %1757 = vmatprep.mubr.msk.bf16.mxu0 %vm2142_vm0, %v2141_v0  ;;  %v2320_v9 = vsel %vm418_vm3, %v352_v8, 0 }
  0x60   :  { %1754 = vmatpush3.bf16.msra.mxu0 %v1926_v30 }
  0x61   :  { %1755 = vmatprep.subr.bf16.mxu0 %v2141_v0 }
  0x64   :  { %1756 = vmatpush3.bf16.msra.mxu0 %v1927_v31 }
  0x65   :  { %1767 = vmatprep.subr.bf16.mxu0 %v2141_v0 }
  0x67   :  { %1758 = vmatmul.mubr.msk.bf16.vlgmr.msra.gmra.mxu0 %vm167_vm1, %v143_v34 }
  0x68   :  { %1769 = vmatprep.mubr.msk.bf16.mxu0 %vm2142_vm0, %v2141_v0 }
 0x11e   :  { %v272_v12 = vpop.f32.mrf.mxu1  ;;  %v205_v13 = vpop.f32.mrf.mxu0 }
 0x11f   :  { %v206_v15 = vadd.f32 %v1639_v11, %v205_v13  ;;  %v273_v19 = vadd.f32 %v1643_v14, %v272_v12 }
 0x120   :  { %v1751_v16 = vpop.f32.mrf.mxu1  ;;  %v1743_v17 = vpop.f32.mrf.mxu0 }
 0x121   :  { %v346_v22 = vmul.f32 0.35355338, %v206_v15 }
 0x122   :  { %v275_v18 = vpop.f32.mrf.mxu1  ;;  %v208_v21 = vpop.f32.mrf.mxu0 }
 0x123   :  { %v276_v20 = vadd.f32 %v1643_v14, %v275_v18  ;;  %v209_v23 = vadd.f32 %v1639_v11, %v208_v21  ;;  %v351_v14 = vld [vmem:[#allocation13] sm:$0xf] }
 0x124   :  { %v1752_v24 = vpop.f32.mrf.mxu1  ;;  %v1744_v26 = vpop.f32.mrf.mxu0  ;;  %v2327_v17 = vsel %vm418_vm3, %v351_v14, 0 }
 0x125   :  { %v2271_v25 = vpack.c.bf16 %v276_v20, %v273_v19  ;;  %v347_v27 = vmul.f32 0.35355338, %v209_v23 }
 0x127   :  { %467 = vrot.lane.b32.xlu0 %v2271_v25, %s2143_s7  ;;  %v361_v28 = vsel %vm356_vm2, %v2271_v25, 0  ;;  %v2277_v29 = vpack.c.bf16 %v347_v27, %v346_v22  ;;  %v339_v51 = vpop.f32.mrf.mxu0 }
 0x128   :  { %1762 = vmatpush3.bf16.xpose.msra.mxu1 %v361_v28  ;;  %v340_v58 = vadd.f32 %v1647_v57, %v339_v51 }
 0x129   :  { %1773 = vmatprep.subr.bf16.mxu1 %v2141_v0  ;;  %v1759_v52 = vpop.f32.mrf.mxu0 }
 0x12b   :  { %464 = vrot.lane.b32.xlu0 %v2277_v29, %s2143_s7  ;;  %v342_v53 = vpop.f32.mrf.mxu0 }
 0x12c   :  { %v343_v59 = vadd.f32 %v1647_v57, %v342_v53 }
 0x12d   :  { %v1760_v54 = vpop.f32.mrf.mxu0 }
 0x12e   :  { %v2302_v60 = vpack.c.bf16 %v343_v59, %v340_v58 }
 0x12f   :  { %1764 = vmatmul.mubr.msk.bf16.vlgmr.msra.gmra.mxu1 %vm356_vm2, %v2277_v29 }
 0x130   :  { %1775 = vmatprep.mubr.msk.bf16.mxu1 %vm2142_vm0, %v2141_v0  ;;  %v420_v61 = vsel %vm418_vm3, %v2302_v60, 0 }
 0x131   :  { %1768 = vmatpush3.bf16.msra.mxu0 %v420_v61  ;;  %v353_v61 = vld [vmem:[#allocation13 + $0x8] sm:$0xf] }
 0x132   :  { %1779 = vmatprep.subr.bf16.mxu0 %v2141_v0 }
 0x199   :  { %v468_v35 = vpop.permute.xlu0 %467 }
 0x19a   :  { %v473_v36 = vsel %vm356_vm2, %v468_v35, 0 }
 0x19b   :  { %1774 = vmatpush3.bf16.xpose.msra.mxu1 %v473_v36 }
 0x19c   :  { %1785 = vmatprep.subr.bf16.mxu1 %v2141_v0 }
 0x19d   :  { %v465_v37 = vpop.permute.xlu0 %464 }
 0x1a2   :  { %1776 = vmatmul.mubr.msk.bf16.vlgmr.msra.gmra.mxu1 %vm356_vm2, %v465_v37 }
 0x1a3   :  { %1787 = vmatprep.mubr.msk.bf16.mxu1 %vm2142_vm0, %v2141_v0  ;;  %1786 = vmatpush3.bf16.msra.mxu1 %v2320_v9 }
 0x1a4   :  { %1797 = vmatprep.subr.bf16.mxu1 %v2141_v0 }
 0x1ef   :  { %v397_v38 = vpop.f32.mrf.mxu1 }
 0x1f0   :  { %v403_v39 = vsel %vm356_vm2, %v397_v38, -inf }
 0x1f1   :  { %404 = vmax.xlane.f32.xlu1 %v403_v39  ;;  %v1765_v40 = vpop.f32.mrf.mxu1 }
 0x1f3   :  { %v400_v41 = vpop.f32.mrf.mxu1 }
 0x1f5   :  { %v1766_v42 = vpop.f32.mrf.mxu1 }
 0x262   :  { %v509_v43 = vpop.f32.mrf.mxu1 }
 0x263   :  { %v515_v44 = vsel %vm356_vm2, %v509_v43, -inf }
 0x264   :  { %516 = vmax.xlane.f32.xlu1 %v515_v44  ;;  %v1777_v45 = vpop.f32.mrf.mxu1 }
 0x266   :  { %v512_v46 = vpop.f32.mrf.mxu1 }
 0x268   :  { %v1778_v47 = vpop.f32.mrf.mxu1 }
 0x27a   :  { %v405_v48 = vpop.xlane.xlu1 %404 }
 0x27b   :  { %v406_v49 = vsub.f32 %v397_v38, %v405_v48 }
 0x27d   :  { %v407_v50 = vmul.f32 1.442695, %v406_v49 }
 0x27f   :  { %1928 = vpow2.f32 %v407_v50 }
 0x28c   :  { %v1929_v55 = vpop.eup %1928 }
 0x28d   :  { %v409_v56 = vsel %vm356_vm2, %v1929_v55, 0.0 }
 0x28e   :  { %410 = vadd.xlane.f32.xlu0 %v409_v56 }
 0x2a4   :  { %731 = vrot.lane.b32.xlu0 %v2302_v60, %s2144_s17 }
 0x2ed   :  { %v517_v62 = vpop.xlane.xlu1 %516 }
 0x2ee   :  { %v518_v63 = vsub.f32 %v509_v43, %v517_v62  ;;  %v2366_v62 = vsel %vm418_vm3, %v353_v61, 0 }
 0x2f0   :  { %v519_v1 = vmul.f32 1.442695, %v518_v63 }
 0x2f2   :  { %1930 = vpow2.f32 %v519_v1 }
 0x2ff   :  { %v1931_v2 = vpop.eup %1930 }
 0x300   :  { %v521_v3 = vsel %vm356_vm2, %v1931_v2, 0.0 }
 0x301   :  { %522 = vadd.xlane.f32.xlu1 %v521_v3 }
 0x312   :  { %528 = vrot.lane.b32.xlu1 %v2302_v60, %s2143_s7 }
 0x316   :  { %671 = vrot.lane.b32.xlu1 %v2271_v25, %s2144_s17 }
 0x317   :  { %v411_v4 = vpop.xlane.xlu0 %410 }
 0x318   :  { %1932 = vrcp.f32 %v411_v4 }
 0x31a   :  { %669 = vrot.lane.b32.xlu1 %v2277_v29, %s2144_s17 }
 0x31b   :  { %v732_v18 = vpop.permute.xlu0 %731 }
 0x31c   :  { %v737_v22 = vsel %vm418_vm3, %v732_v18, 0  ;;  %v2383_v18 = vrot.slane %v2277_v29, 4 }
 0x325   :  { %v1933_v5 = vpop.eup %1932 }
 0x326   :  { %v413_v6 = vmul.f32 %v1933_v5, %v1929_v55 }
 0x328   :  { %v414_v7 = vpack.c.bf16 %v413_v6, %v413_v6 }
 0x32a   :  { %1770 = vmatmul.mubr.msk.bf16.vlgmr.msra.gmra.mxu0 %vm356_vm2, %v414_v7 }
 0x32b   :  { %1781 = vmatprep.mubr.msk.bf16.mxu0 %vm2142_vm0, %v2141_v0 }
 0x38a   :  { %v523_v10 = vpop.xlane.xlu1 %522 }
 0x38b   :  { %1934 = vrcp.f32 %v523_v10 }
 0x38e   :  { %v529_v11 = vpop.permute.xlu1 %528 }
 0x38f   :  { %v534_v12 = vsel %vm418_vm3, %v529_v11, 0 }
 0x390   :  { %1780 = vmatpush3.bf16.msra.mxu0 %v534_v12 }
 0x391   :  { %1791 = vmatprep.subr.bf16.mxu0 %v2141_v0 }
 0x392   :  { %v672_v26 = vpop.permute.xlu1 %671 }
 0x393   :  { %v677_v31 = vsel %vm356_vm2, %v672_v26, 0 }
 0x396   :  { %v670_v34 = vpop.permute.xlu1 %669 }
 0x398   :  { %v1935_v13 = vpop.eup %1934 }
 0x399   :  { %v525_v15 = vmul.f32 %v1935_v13, %v1931_v2 }
 0x39b   :  { %v526_v16 = vpack.c.bf16 %v525_v15, %v525_v15 }
 0x39d   :  { %1782 = vmatmul.mubr.msk.bf16.vlgmr.msra.gmra.mxu0 %vm356_vm2, %v526_v16  ;;  %v2378_v16 = vrot.slane %v2271_v25, 4 }
 0x39e   :  { %1792 = vmatpush3.bf16.msra.mxu0 %v2327_v17  ;;  %1793 = vmatprep.mubr.msk.bf16.mxu0 %vm2142_vm0, %v2141_v0 }
 0x39f   :  { %1803 = vmatprep.subr.bf16.mxu0 %v2141_v0 }
 0x3ea   :  { %v456_v19 = vpop.f32.mrf.mxu0 }
 0x3eb   :  { %v462_v20 = vpack.c.bf16 %v456_v19, %v456_v19 }
 0x3ec   :  { %v1771_v21 = vpop.f32.mrf.mxu0 }
 0x3ed   :  { %1794 = vmatmul.mubr.msk.bf16.vlgmr.msra.gmra.mxu0 %vm356_vm2, %v462_v20 }
 0x3ee   :  { %1804 = vmatpush3.bf16.msra.mxu0 %v737_v22  ;;  %v459_v23 = vpop.f32.mrf.mxu0  ;;  %1805 = vmatprep.mubr.msk.bf16.mxu0 %vm2142_vm0, %v2141_v0 }
 0x3ef   :  { %1815 = vmatprep.subr.bf16.mxu0 %v2141_v0 }
 0x3f0   :  { %v1772_v24 = vpop.f32.mrf.mxu0 }
 0x45d   :  { %v570_v27 = vpop.f32.mrf.mxu0 }
 0x45e   :  { %v576_v28 = vpack.c.bf16 %v570_v27, %v570_v27 }
 0x45f   :  { %v1783_v30 = vpop.f32.mrf.mxu0 }
 0x460   :  { %1788 = vmatmul.mubr.msk.bf16.vlgmr.msra.gmra.mxu1 %vm356_vm2, %v576_v28 }
 0x461   :  { %1798 = vmatpush3.bf16.xpose.msra.mxu1 %v677_v31  ;;  %v573_v32 = vpop.f32.mrf.mxu0  ;;  %1799 = vmatprep.mubr.msk.bf16.mxu1 %vm2142_vm0, %v2141_v0 }
 0x462   :  { %1809 = vmatprep.subr.bf16.mxu1 %v2141_v0 }
 0x463   :  { %v1784_v33 = vpop.f32.mrf.mxu0 }
 0x464   :  { %v991_v33 = vsel %vm356_vm2, %v2378_v16, 0 }
 0x468   :  { %1800 = vmatmul.mubr.msk.bf16.vlgmr.msra.gmra.mxu1 %vm356_vm2, %v670_v34 }
 0x469   :  { %1811 = vmatprep.mubr.msk.bf16.mxu1 %vm2142_vm0, %v2141_v0  ;;  %1810 = vmatpush3.bf16.msra.mxu1 %v2366_v62 }
 0x46a   :  { %1821 = vmatprep.subr.bf16.mxu1 %v2141_v0 }
 0x4ad   :  { %v2347_v35 = vpop.f32.mrf.mxu0 }
 0x4af   :  { %v1795_v36 = vpop.f32.mrf.mxu0 }
 0x4b1   :  { %v666_v37 = vpop.f32.mrf.mxu0 }
 0x4b2   :  { %v2416_v37 = vrot.slane %v2302_v60, 4 }
 0x4b3   :  { %v1796_v38 = vpop.f32.mrf.mxu0 }
 0x520   :  { %v2349_v39 = vpop.f32.mrf.mxu1 }
 0x521   :  { %v664_v19 = vadd.f32 %v2347_v35, %v2349_v39 }
 0x522   :  { %v1789_v40 = vpop.f32.mrf.mxu1 }
 0x524   :  { %v620_v41 = vpop.f32.mrf.mxu1 }
 0x525   :  { %v1050_v41 = vsel %vm418_vm3, %v2416_v37, 0 }
 0x526   :  { %v1790_v42 = vpop.f32.mrf.mxu1 }
 0x528   :  { %v713_v43 = vpop.f32.mrf.mxu1 }
 0x529   :  { %v719_v44 = vsel %vm356_vm2, %v713_v43, -inf }
 0x52a   :  { %720 = vmax.xlane.f32.xlu1 %v719_v44  ;;  %v1801_v45 = vpop.f32.mrf.mxu1 }
 0x52c   :  { %v716_v46 = vpop.f32.mrf.mxu1 }
 0x52e   :  { %v1802_v47 = vpop.f32.mrf.mxu1 }
 0x5b3   :  { %v721_v48 = vpop.xlane.xlu1 %720 }
 0x5b4   :  { %v722_v49 = vsub.f32 %v713_v43, %v721_v48 }
 0x5b6   :  { %v723_v50 = vmul.f32 1.442695, %v722_v49 }
 0x5b8   :  { %1936 = vpow2.f32 %v723_v50 }
 0x5c5   :  { %v1937_v51 = vpop.eup %1936 }
 0x5c6   :  { %v725_v52 = vsel %vm356_vm2, %v1937_v51, 0.0 }
 0x5c7   :  { %726 = vadd.xlane.f32.xlu0 %v725_v52 }
 0x5dd   :  { %829 = vrot.lane.b32.xlu0 %v2271_v25, %s2145_s9  ;;  %v354_v25 = vld [vmem:[#allocation13 + $0xc] sm:$0xf] }
 0x5de   :  { %v2392_v26 = vsel %vm418_vm3, %v354_v25, 0 }
 0x5e1   :  { %827 = vrot.lane.b32.xlu0 %v2277_v29, %s2145_s9 }
 0x650   :  { %v727_v53 = vpop.xlane.xlu0 %726 }
 0x651   :  { %1938 = vrcp.f32 %v727_v53 }
 0x654   :  { %v830_v56 = vpop.permute.xlu0 %829 }
 0x655   :  { %v835_v58 = vsel %vm356_vm2, %v830_v56, 0 }
 0x658   :  { %v828_v59 = vpop.permute.xlu0 %827 }
 0x65e   :  { %v1939_v54 = vpop.eup %1938 }
 0x65f   :  { %v729_v55 = vmul.f32 %v1939_v54, %v1937_v51 }
 0x661   :  { %v730_v57 = vpack.c.bf16 %v729_v55, %v729_v55 }
 0x663   :  { %1806 = vmatmul.mubr.msk.bf16.vlgmr.msra.gmra.mxu0 %vm356_vm2, %v730_v57 }
 0x664   :  { %1816 = vmatpush3.bf16.xpose.msra.mxu0 %v835_v58  ;;  %1817 = vmatprep.mubr.msk.bf16.mxu0 %vm2142_vm0, %v2141_v0 }
 0x665   :  { %1827 = vmatprep.subr.bf16.mxu0 %v2141_v0 }
 0x66b   :  { %1818 = vmatmul.mubr.msk.bf16.vlgmr.msra.gmra.mxu0 %vm356_vm2, %v828_v59 }
 0x66c   :  { %1829 = vmatprep.mubr.msk.bf16.mxu0 %vm2142_vm0, %v2141_v0  ;;  %1828 = vmatpush3.bf16.msra.mxu0 %v2392_v26 }
 0x66d   :  { %1839 = vmatprep.subr.bf16.mxu0 %v2141_v0 }
 0x723   :  { %v773_v63 = vpop.f32.mrf.mxu0 }
 0x724   :  { %v779_v1 = vpack.c.bf16 %v773_v63, %v773_v63 }
 0x725   :  { %v1807_v2 = vpop.f32.mrf.mxu0 }
 0x726   :  { %1812 = vmatmul.mubr.msk.bf16.vlgmr.msra.gmra.mxu1 %vm356_vm2, %v779_v1  ;;  %v2433_v1 = vld [vmem:[%s2515_s10] ss:$0 sm:$0xff]  ;;  %s2146_s10 = smov [#allocation14]  }
 0x727   :  { %v776_v3 = vpop.f32.mrf.mxu0  ;;  %1823 = vmatprep.mubr.msk.bf16.mxu1 %vm2142_vm0, %v2141_v0  ;;  %s1624_s19 = sshll.u32 %s2146_s10, 4  ;;  %s1625_s19 = int_to_ptr.vmem [resolvable:$true] %s1624_s19 }
 0x728   :  { %s2100_s20 = scalar_lea.vmem %s1625_s19, 128  ;;  %p2105_p8 = scmp.lt.s32.totalorder %s1625_s19, %s1625_s19 }
 0x729   :  { %v1808_v4 = vpop.f32.mrf.mxu0  ;;  %p2101_p7 = scmp.ne.s32.totalorder %s1625_s19, %s2100_s20  ;;  %p2106_p9 = scmp.lt.s32.totalorder %s2100_s20, %s2100_s20 }
 0x72b   :  { %v871_v5 = vpop.f32.mrf.mxu0  ;;  %p2107_p10 = por %p2106_p9, %p2105_p8 }
 0x72c   :  { %v877_v6 = vsel %vm356_vm2, %v871_v5, -inf }
 0x72d   :  { %878 = vmax.xlane.f32.xlu0 %v877_v6  ;;  %v1819_v7 = vpop.f32.mrf.mxu0  ;;  %p2108_p11 = pnand %p2107_p10, %p2101_p7 }
 0x72f   :  { %v874_v8 = vpop.f32.mrf.mxu0 }
 0x731   :  { %v1820_v10 = vpop.f32.mrf.mxu0 }
 0x7b6   :  { %v879_v11 = vpop.xlane.xlu0 %878 }
 0x7b7   :  { %v880_v12 = vsub.f32 %v871_v5, %v879_v11 }
 0x7b9   :  { %v881_v13 = vmul.f32 1.442695, %v880_v12 }
 0x7bb   :  { %1940 = vpow2.f32 %v881_v13 }
 0x7c8   :  { %v1941_v14 = vpop.eup %1940 }
 0x7c9   :  { %v883_v15 = vsel %vm356_vm2, %v1941_v14, 0.0 }
 0x7ca   :  { %884 = vadd.xlane.f32.xlu1 %v883_v15 }
 0x7db   :  { %889 = vrot.lane.b32.xlu1 %v2302_v60, %s2145_s9 }
 0x7df   :  { %1095 = vrot.lane.b32.xlu1 %v2378_v16, %s2143_s7 }
 0x7e3   :  { %1093 = vrot.lane.b32.xlu1 %v2383_v18, %s2143_s7 }
 0x7e6   :  { %v820_v20 = vpop.f32.mrf.mxu1 }
 0x7e7   :  { %v2389_v21 = vadd.f32 %v820_v20, %v664_v19 }
 0x7e8   :  { %v1813_v22 = vpop.f32.mrf.mxu1 }
 0x7ea   :  { %v823_v23 = vpop.f32.mrf.mxu1 }
 0x7ec   :  { %v1814_v24 = vpop.f32.mrf.mxu1 }
 0x853   :  { %v885_v29 = vpop.xlane.xlu1 %884 }
 0x854   :  { %1942 = vrcp.f32 %v885_v29 }
 0x857   :  { %v890_v27 = vpop.permute.xlu1 %889 }
 0x858   :  { %v895_v28 = vsel %vm418_vm3, %v890_v27, 0 }
 0x859   :  { %1822 = vmatpush3.bf16.msra.mxu1 %v895_v28 }
 0x85a   :  { %1833 = vmatprep.subr.bf16.mxu1 %v2141_v0 }
 0x85b   :  { %v1096_v34 = vpop.permute.xlu1 %1095 }
 0x85c   :  { %v1101_v35 = vsel %vm356_vm2, %v1096_v34, 0 }
 0x85f   :  { %v1094_v36 = vpop.permute.xlu1 %1093 }
 0x861   :  { %v1943_v30 = vpop.eup %1942 }
 0x862   :  { %v887_v31 = vmul.f32 %v1943_v30, %v1941_v14 }
 0x864   :  { %v888_v32 = vpack.c.bf16 %v887_v31, %v887_v31 }
 0x866   :  { %1824 = vmatmul.mubr.msk.bf16.vlgmr.msra.gmra.mxu1 %vm356_vm2, %v888_v32 }
 0x867   :  { %1834 = vmatpush3.bf16.xpose.msra.mxu1 %v991_v33  ;;  %1835 = vmatprep.mubr.msk.bf16.mxu1 %vm2142_vm0, %v2141_v0 }
 0x868   :  { %1845 = vmatprep.subr.bf16.mxu1 %v2141_v0 }
 0x86e   :  { %1836 = vmatmul.mubr.msk.bf16.vlgmr.msra.gmra.mxu1 %vm356_vm2, %v2383_v18 }
 0x86f   :  { %1846 = vmatpush3.bf16.xpose.msra.mxu1 %v1101_v35  ;;  %1847 = vmatprep.mubr.msk.bf16.mxu1 %vm2142_vm0, %v2141_v0 }
 0x870   :  { %1857 = vmatprep.subr.bf16.mxu1 %v2141_v0 }
 0x876   :  { %1848 = vmatmul.mubr.msk.bf16.vlgmr.msra.gmra.mxu1 %vm356_vm2, %v1094_v36 }
 0x877   :  { %1858 = vmatpush3.bf16.msra.mxu1 %v2320_v9  ;;  %1859 = vmatprep.mubr.msk.bf16.mxu1 %vm2142_vm0, %v2141_v0 }
 0x878   :  { %1869 = vmatprep.subr.bf16.mxu1 %v2141_v0 }
 0x926   :  { %v931_v38 = vpop.f32.mrf.mxu1 }
 0x927   :  { %v937_v39 = vpack.c.bf16 %v931_v38, %v931_v38 }
 0x928   :  { %v1825_v40 = vpop.f32.mrf.mxu1 }
 0x929   :  { %1830 = vmatmul.mubr.msk.bf16.vlgmr.msra.gmra.mxu0 %vm356_vm2, %v937_v39 }
 0x92a   :  { %1840 = vmatpush3.bf16.msra.mxu0 %v1050_v41  ;;  %v934_v42 = vpop.f32.mrf.mxu1  ;;  %1841 = vmatprep.mubr.msk.bf16.mxu0 %vm2142_vm0, %v2141_v0 }
 0x92b   :  { %1851 = vmatprep.subr.bf16.mxu0 %v2141_v0 }
 0x92c   :  { %v1826_v9 = vpop.f32.mrf.mxu1 }
 0x92e   :  { %v1027_v43 = vpop.f32.mrf.mxu1 }
 0x92f   :  { %v1033_v60 = vsel %vm356_vm2, %v1027_v43, -inf }
 0x930   :  { %1034 = vmax.xlane.f32.xlu1 %v1033_v60  ;;  %v1837_v44 = vpop.f32.mrf.mxu1 }
 0x932   :  { %v1030_v45 = vpop.f32.mrf.mxu1 }
 0x934   :  { %v1838_v46 = vpop.f32.mrf.mxu1 }
 0x936   :  { %v1137_v47 = vpop.f32.mrf.mxu1 }
 0x937   :  { %v1143_v48 = vsel %vm356_vm2, %v1137_v47, -inf }
 0x938   :  { %1144 = vmax.xlane.f32.xlu0 %v1143_v48  ;;  %v1849_v49 = vpop.f32.mrf.mxu1 }
 0x93a   :  { %v1140_v50 = vpop.f32.mrf.mxu1 }
 0x93c   :  { %v1850_v51 = vpop.f32.mrf.mxu1 }
 0x941   :  { %1290 = vrot.lane.b32.xlu1 %v2383_v18, %s2144_s17 }
 0x9b9   :  { %v1035_v52 = vpop.xlane.xlu1 %1034 }
 0x9ba   :  { %v1036_v53 = vsub.f32 %v1027_v43, %v1035_v52 }
 0x9bc   :  { %v1037_v54 = vmul.f32 1.442695, %v1036_v53 }
 0x9bd   :  { %v1291_v35 = vpop.permute.xlu1 %1290 }
 0x9be   :  { %1944 = vpow2.f32 %v1037_v54 }
 0x9c1   :  { %v1145_v55 = vpop.xlane.xlu0 %1144 }
 0x9c2   :  { %v1146_v56 = vsub.f32 %v1137_v47, %v1145_v55 }
 0x9c4   :  { %v1147_v57 = vmul.f32 1.442695, %v1146_v56 }
 0x9c6   :  { %1946 = vpow2.f32 %v1147_v57 }
 0x9cb   :  { %v1945_v58 = vpop.eup %1944 }
 0x9cc   :  { %v1039_v59 = vsel %vm356_vm2, %v1945_v58, 0.0 }
 0x9cd   :  { %1040 = vadd.xlane.f32.xlu0 %v1039_v59 }
 0x9d3   :  { %v1947_v61 = vpop.eup %1946 }
 0x9d4   :  { %v1149_v63 = vsel %vm356_vm2, %v1947_v61, 0.0 }
 0x9d5   :  { %1150 = vadd.xlane.f32.xlu0 %v1149_v63 }
 0x9e9   :  { %v978_v2 = vpop.f32.mrf.mxu0 }
 0x9ea   :  { %v984_v3 = vadd.f32 %v978_v2, %v2389_v21 }
 0x9eb   :  { %1155 = vrot.lane.b32.xlu0 %v2416_v37, %s2143_s7  ;;  %v1831_v4 = vpop.f32.mrf.mxu0 }
 0x9ec   :  { %v1606_v5 = vadd.f32 %v2433_v1, %v984_v3 }
 0x9ed   :  { %v981_v6 = vpop.f32.mrf.mxu0 }
 0x9ee   :  { %v1678_v7 = vpack.c.bf16 %v1606_v5, %v1606_v5 }
 0x9ef   :  { %1292 = vrot.lane.b32.xlu0 %v2378_v16, %s2144_s17  ;;  %v1832_v8 = vpop.f32.mrf.mxu0 }
 0x9f0   :  { %1617 = vst.msk [vmem:[#allocation14] sm:$0xf] %vm1616_vm4, %v1678_v7 }
 0xa56   :  { %v1041_v10 = vpop.xlane.xlu0 %1040 }
 0xa57   :  { %1948 = vrcp.f32 %v1041_v10 }
 0xa5e   :  { %v1151_v11 = vpop.xlane.xlu0 %1150 }
 0xa5f   :  { %1950 = vrcp.f32 %v1151_v11 }
 0xa62   :  { %v1156_v14 = vpop.permute.xlu0 %1155 }
 0xa63   :  { %v1161_v19 = vsel %vm418_vm3, %v1156_v14, 0 }
 0xa64   :  { %v1949_v12 = vpop.eup %1948 }
 0xa65   :  { %v1043_v13 = vmul.f32 %v1949_v12, %v1945_v58 }
 0xa66   :  { %v1293_v28 = vpop.permute.xlu0 %1292 }
 0xa67   :  { %v1044_v15 = vpack.c.bf16 %v1043_v13, %v1043_v13 }
 0xa69   :  { %1842 = vmatmul.mubr.msk.bf16.vlgmr.msra.gmra.mxu0 %vm356_vm2, %v1044_v15 }
 0xa6a   :  { %1852 = vmatpush3.bf16.msra.mxu0 %v1161_v19  ;;  %1853 = vmatprep.mubr.msk.bf16.mxu0 %vm2142_vm0, %v2141_v0 }
 0xa6b   :  { %1863 = vmatprep.subr.bf16.mxu0 %v2141_v0 }
 0xa6c   :  { %v1951_v20 = vpop.eup %1950 }
 0xa6d   :  { %v1153_v21 = vmul.f32 %v1951_v20, %v1947_v61 }
 0xa6f   :  { %v1154_v22 = vpack.c.bf16 %v1153_v21, %v1153_v21 }
 0xa71   :  { %1854 = vmatmul.mubr.msk.bf16.vlgmr.msra.gmra.mxu0 %vm356_vm2, %v1154_v22 }
 0xa72   :  { %1864 = vmatpush3.bf16.msra.mxu0 %v2327_v17  ;;  %1865 = vmatprep.mubr.msk.bf16.mxu0 %vm2142_vm0, %v2141_v0  ;;  %v1298_v17 = vsel %vm356_vm2, %v1293_v28, 0 }
 0xa73   :  { %1875 = vmatprep.subr.bf16.mxu0 %v2141_v0 }
 0xb29   :  { %v1086_v23 = vpop.f32.mrf.mxu0 }
 0xb2a   :  { %v1092_v24 = vpack.c.bf16 %v1086_v23, %v1086_v23 }
 0xb2b   :  { %v1843_v25 = vpop.f32.mrf.mxu0 }
 0xb2c   :  { %1866 = vmatmul.mubr.msk.bf16.vlgmr.msra.gmra.mxu0 %vm356_vm2, %v1092_v24 }
 0xb2d   :  { %v1089_v29 = vpop.f32.mrf.mxu0  ;;  %1877 = vmatprep.mubr.msk.bf16.mxu0 %vm2142_vm0, %v2141_v0 }
 0xb2f   :  { %v1844_v27 = vpop.f32.mrf.mxu0 }
 0xb31   :  { %v1197_v30 = vpop.f32.mrf.mxu0 }
 0xb32   :  { %v1203_v31 = vpack.c.bf16 %v1197_v30, %v1197_v30 }
 0xb33   :  { %v1855_v32 = vpop.f32.mrf.mxu0 }
 0xb34   :  { %1860 = vmatmul.mubr.msk.bf16.vlgmr.msra.gmra.mxu1 %vm356_vm2, %v1203_v31 }
 0xb35   :  { %1870 = vmatpush3.bf16.xpose.msra.mxu1 %v1298_v17  ;;  %v1200_v33 = vpop.f32.mrf.mxu0  ;;  %1871 = vmatprep.mubr.msk.bf16.mxu1 %vm2142_vm0, %v2141_v0 }
 0xb36   :  { %1881 = vmatprep.subr.bf16.mxu1 %v2141_v0 }
 0xb37   :  { %v1856_v34 = vpop.f32.mrf.mxu0 }
 0xb3c   :  { %1872 = vmatmul.mubr.msk.bf16.vlgmr.msra.gmra.mxu1 %vm356_vm2, %v1291_v35 }
 0xb3d   :  { %1882 = vmatpush3.bf16.msra.mxu1 %v2366_v62  ;;  %1883 = vmatprep.mubr.msk.bf16.mxu1 %vm2142_vm0, %v2141_v0 }
 0xb3e   :  { %1893 = vmatprep.subr.bf16.mxu1 %v2141_v0 }
 0xbec   :  { %v1284_v36 = vpop.f32.mrf.mxu0 }
 0xbee   :  { %v1867_v38 = vpop.f32.mrf.mxu0 }
 0xbf0   :  { %v1287_v39 = vpop.f32.mrf.mxu0 }
 0xbf2   :  { %v1868_v40 = vpop.f32.mrf.mxu0 }
 0xbf4   :  { %v1241_v41 = vpop.f32.mrf.mxu1 }
 0xbf5   :  { %v2465_v42 = vadd.f32 %v1284_v36, %v1241_v41 }
 0xbf6   :  { %v1861_v9 = vpop.f32.mrf.mxu1 }
 0xbf8   :  { %v1244_v43 = vpop.f32.mrf.mxu1 }
 0xbfa   :  { %v1862_v60 = vpop.f32.mrf.mxu1 }
 0xbfc   :  { %v1334_v44 = vpop.f32.mrf.mxu1 }
 0xbfd   :  { %v1340_v45 = vsel %vm356_vm2, %v1334_v44, -inf }
 0xbfe   :  { %1341 = vmax.xlane.f32.xlu0 %v1340_v45  ;;  %v1873_v62 = vpop.f32.mrf.mxu1 }
 0xc00   :  { %v1337_v46 = vpop.f32.mrf.mxu1 }
 0xc02   :  { %v1874_v47 = vpop.f32.mrf.mxu1 }
 0xc14   :  { %1352 = vrot.lane.b32.xlu0 %v2416_v37, %s2144_s17 }
 0xc18   :  { %1445 = vrot.lane.b32.xlu0 %v2383_v18, %s2145_s9 }
 0xc87   :  { %v1342_v48 = vpop.xlane.xlu0 %1341 }
 0xc88   :  { %v1343_v49 = vsub.f32 %v1334_v44, %v1342_v48 }
 0xc8a   :  { %v1344_v50 = vmul.f32 1.442695, %v1343_v49 }
 0xc8b   :  { %v1353_v51 = vpop.permute.xlu0 %1352 }
 0xc8c   :  { %1952 = vpow2.f32 %v1344_v50  ;;  %v1358_v52 = vsel %vm418_vm3, %v1353_v51, 0 }
 0xc8d   :  { %1876 = vmatpush3.bf16.msra.mxu0 %v1358_v52 }
 0xc8e   :  { %1887 = vmatprep.subr.bf16.mxu0 %v2141_v0 }
 0xc8f   :  { %v1446_v61 = vpop.permute.xlu0 %1445 }
 0xc99   :  { %v1953_v53 = vpop.eup %1952 }
 0xc9a   :  { %v1346_v54 = vsel %vm356_vm2, %v1953_v53, 0.0 }
 0xc9b   :  { %1347 = vadd.xlane.f32.xlu1 %v1346_v54 }
 0xcac   :  { %1447 = vrot.lane.b32.xlu1 %v2378_v16, %s2145_s9 }
 0xd24   :  { %v1348_v55 = vpop.xlane.xlu1 %1347 }
 0xd25   :  { %1954 = vrcp.f32 %v1348_v55 }
 0xd28   :  { %v1448_v57 = vpop.permute.xlu1 %1447 }
 0xd29   :  { %v1453_v59 = vsel %vm356_vm2, %v1448_v57, 0 }
 0xd32   :  { %v1955_v18 = vpop.eup %1954 }
 0xd33   :  { %v1350_v56 = vmul.f32 %v1955_v18, %v1953_v53 }
 0xd35   :  { %v1351_v58 = vpack.c.bf16 %v1350_v56, %v1350_v56 }
 0xd37   :  { %1878 = vmatmul.mubr.msk.bf16.vlgmr.msra.gmra.mxu0 %vm356_vm2, %v1351_v58 }
 0xd38   :  { %1888 = vmatpush3.bf16.xpose.msra.mxu0 %v1453_v59  ;;  %1889 = vmatprep.mubr.msk.bf16.mxu0 %vm2142_vm0, %v2141_v0 }
 0xd39   :  { %1899 = vmatprep.subr.bf16.mxu0 %v2141_v0 }
 0xd3f   :  { %1890 = vmatmul.mubr.msk.bf16.vlgmr.msra.gmra.mxu0 %vm356_vm2, %v1446_v61 }
 0xd40   :  { %1900 = vmatpush3.bf16.msra.mxu0 %v2392_v26  ;;  %1901 = vmatprep.mubr.msk.bf16.mxu0 %vm2142_vm0, %v2141_v0 }
 0xdf7   :  { %v1394_v16 = vpop.f32.mrf.mxu0 }
 0xdf8   :  { %v1400_v63 = vpack.c.bf16 %v1394_v16, %v1394_v16 }
 0xdf9   :  { %v1879_v2 = vpop.f32.mrf.mxu0 }
 0xdfa   :  { %1884 = vmatmul.mubr.msk.bf16.vlgmr.msra.gmra.mxu1 %vm356_vm2, %v1400_v63 }
 0xdfb   :  { %v1397_v3 = vpop.f32.mrf.mxu0  ;;  %1895 = vmatprep.mubr.msk.bf16.mxu1 %vm2142_vm0, %v2141_v0 }
 0xdfd   :  { %v1880_v4 = vpop.f32.mrf.mxu0 }
 0xdff   :  { %v1489_v5 = vpop.f32.mrf.mxu0 }
 0xe00   :  { %v1495_v6 = vsel %vm356_vm2, %v1489_v5, -inf }
 0xe01   :  { %1496 = vmax.xlane.f32.xlu0 %v1495_v6  ;;  %v1891_v7 = vpop.f32.mrf.mxu0 }
 0xe03   :  { %v1492_v8 = vpop.f32.mrf.mxu0 }
 0xe05   :  { %v1892_v26 = vpop.f32.mrf.mxu0 }
 0xe17   :  { %1507 = vrot.lane.b32.xlu0 %v2416_v37, %s2145_s9 }
 0xe8a   :  { %v1497_v10 = vpop.xlane.xlu0 %1496 }
 0xe8b   :  { %v1498_v11 = vsub.f32 %v1489_v5, %v1497_v10 }
 0xe8d   :  { %v1499_v12 = vmul.f32 1.442695, %v1498_v11 }
 0xe8e   :  { %v1508_v13 = vpop.permute.xlu0 %1507 }
 0xe8f   :  { %1956 = vpow2.f32 %v1499_v12  ;;  %v1513_v14 = vsel %vm418_vm3, %v1508_v13, 0 }
 0xe90   :  { %1894 = vmatpush3.bf16.msra.mxu1 %v1513_v14 }
 0xe9c   :  { %v1957_v0 = vpop.eup %1956 }
 0xe9d   :  { %v1501_v15 = vsel %vm356_vm2, %v1957_v0, 0.0 }
 0xe9e   :  { %1502 = vadd.xlane.f32.xlu1 %v1501_v15 }
 0xeba   :  { %v1438_v19 = vpop.f32.mrf.mxu1 }
 0xebb   :  { %v1444_v20 = vadd.f32 %v1438_v19, %v2465_v42 }
 0xebc   :  { %v1885_v21 = vpop.f32.mrf.mxu1 }
 0xebe   :  { %v1441_v22 = vpop.f32.mrf.mxu1 }
 0xec0   :  { %v1886_v23 = vpop.f32.mrf.mxu1 }
 0xf27   :  { %v1503_v24 = vpop.xlane.xlu1 %1502 }
 0xf28   :  { %1958 = vrcp.f32 %v1503_v24 }
 0xf35   :  { %v1959_v37 = vpop.eup %1958 }
 0xf36   :  { %v1505_v25 = vmul.f32 %v1959_v37, %v1957_v0 }
 0xf38   :  { %v1506_v29 = vpack.c.bf16 %v1505_v25, %v1505_v25 }
 0xf3a   :  { %1896 = vmatmul.mubr.msk.bf16.vlgmr.msra.gmra.mxu1 %vm356_vm2, %v1506_v29 }
 0xffa   :  { %v1549_v27 = vpop.f32.mrf.mxu1 }
 0xffb   :  { %v1555_v28 = vpack.c.bf16 %v1549_v27, %v1549_v27 }
 0xffc   :  { %v1897_v30 = vpop.f32.mrf.mxu1 }
 0xffd   :  { %1902 = vmatmul.mubr.msk.bf16.vlgmr.msra.gmra.mxu0 %vm356_vm2, %v1555_v28 }
 0xffe   :  { %v1552_v31 = vpop.f32.mrf.mxu1 }
0x1000   :  { %v1898_v32 = vpop.f32.mrf.mxu1 }
0x10bd   :  { %v1593_v17 = vpop.f32.mrf.mxu0 }
0x10be   :  { %v1599_v33 = vadd.f32 %v1593_v17, %v1444_v20 }
0x10bf   :  { %v1903_v34 = vpop.f32.mrf.mxu0 }
0x10c0   :  { %v1607_v35 = vadd.f32 %v2433_v1, %v1599_v33 }
0x10c1   :  { %v1596_v36 = vpop.f32.mrf.mxu0 }
0x10c2   :  { %v1679_v38 = vpack.c.bf16 %v1607_v35, %v1607_v35 }
0x10c3   :  { %v1904_v39 = vpop.f32.mrf.mxu0 }
0x10c4   :  { %1618 = vst.msk [vmem:[#allocation14 + $0x4] sm:$0xf] %vm1616_vm4, %v1679_v38 }
0x10c5   :  { %2111 = shalt.err (!%p2108_p11)
}
0x10c6   :  { %1630 = dma.vmem_to_hbm [thread:$0]  %s1625_s19, 128, %s2516_s11, [#allocation4], %s2134_s27, %s2134_s27, %s2135_s28  }
0x10c7   :  { %2128 = dma.done.wait [#allocation4], 128  }
0x10c8   :  { %2129 = vsyncadd [#allocation4], 4294967168 }
0x10c9   :  { %1634 = vsyncpa [#allocation3], 1 }
0x10ca   :  { %1635 = vsyncpa [#allocation6], 1 }
0x10cb   :  { %1636 = vsyncpa [#allocation9], 1 }
0x10cc   :  { %1637 = vsyncpa [#allocation12], 1 }
0x10cd   :  { %1638 = vsyncpa [#allocation4], 1 }

</bundles_post_ra>
